<compile_context>
chip_gen: v6e
topology: v6e:2x2x1
jax: 0.10.0
libtpu: 0.0.40
codegen_flags: <defaults>
</compile_context>

<pallas_src>
import functools
import math

import jax
import jax.numpy as jnp
from jax import lax
from jax.experimental import pallas as pl
from jax.experimental.pallas import tpu as pltpu


# ---------------------------------------------------------------------------
# Fused encoder kernel: grid = (batch_tiles, num_layers)
# ---------------------------------------------------------------------------

def _encoder_kernel(emb_ref, mask_ref, embln_ref,
                    wqkv_ref, bqkv_ref, wo_ref, avec_ref,
                    w1_ref, b1_ref, w2_ref, fvec_ref,
                    o_ref, h_sc, ctx_sc, *, num_heads, eps):
    """One (batch_tile, layer) grid step of the full transformer stack.

    h_sc  : [bt*S, H] f32 VMEM carry of the residual stream across layers.
    ctx_sc: [bt*S, H] f32 VMEM slab the per-head contexts are written into.
    """
    l = pl.program_id(1)
    bt, seq, hidden = emb_ref.shape
    n_tok = bt * seq
    dh = hidden // num_heads
    scale = 1.0 / math.sqrt(dh)

    def layernorm(x, gamma, beta):
        mu = jnp.mean(x, axis=-1, keepdims=True)
        var = jnp.mean((x - mu) ** 2, axis=-1, keepdims=True)
        return (x - mu) * lax.rsqrt(var + eps) * gamma + beta

    # ---- layer 0: embedding LayerNorm initializes the f32 carry ----
    @pl.when(l == 0)
    def _():
        x = emb_ref[...].astype(jnp.float32).reshape(n_tok, hidden)
        embln = embln_ref[...]                       # [2, H]: gamma, beta
        h_sc[...] = layernorm(x, embln[0:1, :], embln[1:2, :])

    # ---- fused QKV projection on the whole token slab (M = bt*S) ----
    h_bf = h_sc[...].astype(jnp.bfloat16)            # bf16 MXU operand
    qkv = jnp.dot(h_bf, wqkv_ref[0],
                  preferred_element_type=jnp.float32) + bqkv_ref[0]  # [N, 3H]

    mask = mask_ref[...].astype(jnp.float32)         # [bt, 1, S] additive

    # ---- multi-head attention, each head batched over the bt batches ----
    for hd in range(num_heads):
        lo = hd * dh
        q_h = qkv[:, lo:lo + dh].astype(jnp.bfloat16).reshape(bt, seq, dh)
        k_h = qkv[:, hidden + lo:hidden + lo + dh].astype(
            jnp.bfloat16).reshape(bt, seq, dh)
        v_h = qkv[:, 2 * hidden + lo:2 * hidden + lo + dh].astype(
            jnp.bfloat16).reshape(bt, seq, dh)

        s = jnp.einsum("bqd,bkd->bqk", q_h, k_h,
                       preferred_element_type=jnp.float32) * scale
        s = s + mask                                  # broadcast over queries
        s = s - jnp.max(s, axis=-1, keepdims=True)
        p = jnp.exp(s)
        p = p * pl.reciprocal(jnp.sum(p, axis=-1, keepdims=True), approx=True)
        ctx_h = jnp.einsum("bqk,bkd->bqd", p.astype(jnp.bfloat16), v_h,
                           preferred_element_type=jnp.float32)
        # write straight into the lane-addressed VMEM slab (no concat)
        ctx_sc[:, lo:lo + dh] = ctx_h.reshape(n_tok, dh)

    # ---- output projection + residual + LayerNorm ----
    avec = avec_ref[0]                                # [3, H]: bo, ln1_g, ln1_b
    attn = jnp.dot(ctx_sc[...].astype(jnp.bfloat16), wo_ref[0],
                   preferred_element_type=jnp.float32) + avec[0:1, :]
    # residual re-reads the f32 carry here (not held live across the matmuls)
    h1 = layernorm(attn + h_sc[...], avec[1:2, :], avec[2:3, :])
    h_sc[...] = h1

    # ---- FFN: ff1 + GELU + ff2 + residual + LayerNorm ----
    ff = jnp.dot(h1.astype(jnp.bfloat16), w1_ref[0],
                 preferred_element_type=jnp.float32) + b1_ref[0]      # [N, I]
    c = math.sqrt(2.0 / math.pi)
    ff = 0.5 * ff * (1.0 + jnp.tanh(c * (ff + 0.044715 * ff * ff * ff)))

    fvec = fvec_ref[0]                                # [3, H]: b_ff2, ln2_g, ln2_b
    ff2 = jnp.dot(ff.astype(jnp.bfloat16), w2_ref[0],
                  preferred_element_type=jnp.float32) + fvec[0:1, :]
    h2 = layernorm(ff2 + h_sc[...], fvec[1:2, :], fvec[2:3, :])
    h_sc[...] = h2

    # ---- last layer: flush the carry into the (VMEM-resident) output ----
    @pl.when(l == pl.num_programs(1) - 1)
    def _():
        o_ref[...] = h2.reshape(bt, seq, hidden).astype(o_ref.dtype)


def _pick_batch_tile(batch, seq, max_tokens=1024):
    """Largest divisor of batch whose bt*seq token slab fills the MXU M dim
    without blowing VMEM at larger scales."""
    bt = 1
    for d in range(1, batch + 1):
        if batch % d == 0 and d * seq <= max_tokens:
            bt = d
    return bt


def encoder_forward(params, emb, add_mask, *, eps=1e-12):
    b, s, h = emb.shape
    nl = params["wqkv"].shape[0]
    inter = params["w_ff1"].shape[2]
    bt = _pick_batch_tile(b, s)
    grid = (b // bt, nl)

    return pl.pallas_call(
        functools.partial(_encoder_kernel, num_heads=params["num_heads"],
                          eps=eps),
        out_shape=jax.ShapeDtypeStruct((b, s, h), jnp.bfloat16),
        grid=grid,
        in_specs=[
            pl.BlockSpec((bt, s, h), lambda i, l: (i, 0, 0)),       # emb (bf16)
            pl.BlockSpec((bt, 1, s), lambda i, l: (i, 0, 0)),       # add. mask
            pl.BlockSpec((2, h), lambda i, l: (0, 0)),              # emb LN g/b
            pl.BlockSpec((1, h, 3 * h), lambda i, l: (l, 0, 0)),    # Wqkv
            pl.BlockSpec((1, 1, 3 * h), lambda i, l: (l, 0, 0)),    # bqkv
            pl.BlockSpec((1, h, h), lambda i, l: (l, 0, 0)),        # Wo
            pl.BlockSpec((1, 3, h), lambda i, l: (l, 0, 0)),        # bo|ln1_g|ln1_b
            pl.BlockSpec((1, h, inter), lambda i, l: (l, 0, 0)),    # W_ff1
            pl.BlockSpec((1, 1, inter), lambda i, l: (l, 0, 0)),    # b_ff1
            pl.BlockSpec((1, inter, h), lambda i, l: (l, 0, 0)),    # W_ff2
            pl.BlockSpec((1, 3, h), lambda i, l: (l, 0, 0)),        # b_ff2|ln2_g|ln2_b
        ],
        out_specs=pl.BlockSpec((bt, s, h), lambda i, l: (i, 0, 0)),
        scratch_shapes=[
            pltpu.VMEM((bt * s, h), jnp.float32),   # residual-stream carry
            pltpu.VMEM((bt * s, h), jnp.float32),   # per-head context slab
        ],
        compiler_params=pltpu.CompilerParams(
            dimension_semantics=("parallel", "arbitrary"),
            vmem_limit_bytes=64 * 1024 * 1024),
    )(emb, add_mask, params["emb_ln"],
      params["wqkv"], params["bqkv"], params["wo"], params["attn_vec"],
      params["w_ff1"], params["b_ff1"], params["w_ff2"], params["ffn_vec"])


# ---------------------------------------------------------------------------
# Fused pooler (CLS -> Linear -> tanh) + both classifier heads
# ---------------------------------------------------------------------------

def _pool_head_kernel(cls_ref, pw_ref, pb_ref, hw_ref, hb_ref, o_ref):
    cls = cls_ref[...]                                        # [B, H] bf16
    pooled = jnp.tanh(jnp.dot(cls, pw_ref[...],
                              preferred_element_type=jnp.float32) + pb_ref[...])
    # dropout(0.1): identity in eval mode.
    logits = jnp.dot(pooled.astype(jnp.bfloat16), hw_ref[...],
                     preferred_element_type=jnp.float32) + hb_ref[...]
    o_ref[...] = logits.astype(o_ref.dtype)


def pool_and_heads(cls, params):
    b, h = cls.shape
    c = params["head_w"].shape[1]
    return pl.pallas_call(
        _pool_head_kernel,
        out_shape=jax.ShapeDtypeStruct((b, c), jnp.float32),
        grid=(1,),
        in_specs=[
            pl.BlockSpec((b, h), lambda i: (0, 0)),
            pl.BlockSpec((h, h), lambda i: (0, 0)),
            pl.BlockSpec((1, h), lambda i: (0, 0)),
            pl.BlockSpec((h, c), lambda i: (0, 0)),
            pl.BlockSpec((1, c), lambda i: (0, 0)),
        ],
        out_specs=pl.BlockSpec((b, c), lambda i: (0, 0)),
    )(cls, params["pool_w"], params["pool_b"],
      params["head_w"], params["head_b"])


# ---------------------------------------------------------------------------
# Losses (plain jnp glue — per review, cheaper than extra tiny pallas_calls)
# ---------------------------------------------------------------------------

def token_loss(logits, labels, focal=False, gamma=2.0):
    """Mean CrossEntropy / Focal loss with ignore_index=-1."""
    logits = logits.astype(jnp.float32)
    logp = jax.nn.log_softmax(logits, axis=-1)
    if focal:
        logp = (1.0 - jnp.exp(logp)) ** gamma * logp
    valid = labels != -1
    safe = jnp.where(valid, labels, 0)
    nll = -jnp.take_along_axis(logp, safe[:, None], axis=-1)[:, 0]
    nll = jnp.where(valid, nll, 0.0)
    return jnp.sum(nll) / jnp.maximum(jnp.sum(valid.astype(jnp.float32)), 1.0)


# ---------------------------------------------------------------------------
# Model glue (embedding gathers + orchestration)
# ---------------------------------------------------------------------------

def forward(params, input_id, mask_id, token_type_id, labels=None,
            focal_loss=False):
    """Mirrors BERT_based_classifier_multitask.forward (eval mode)."""
    batch, seq = input_id.shape
    num_labels = params["num_labels"]

    # embeddings (gathers fused by XLA) summed in f32, handed to the kernel in
    # bf16 — the embedding LayerNorm runs inside the encoder kernel at l==0.
    emb = (jnp.take(params["word_emb"], input_id, axis=0)
           + params["pos_emb"][None, :seq, :]
           + jnp.take(params["type_emb"], token_type_id, axis=0)
           ).astype(jnp.bfloat16)                               # [B, S, H]

    # additive attention mask: 0 for tokens, -1e9 for padding -> [B, 1, S]
    add_mask = ((1.0 - mask_id.astype(jnp.float32)) * -1e9)[:, None, :]

    # whole transformer stack in a single pallas_call
    h = encoder_forward(params, emb, add_mask)                  # [B, S, H] bf16

    cls = h[:, 0, :]                                            # [B, H]
    logits = pool_and_heads(cls, params)                        # [B, C1+C2] f32
    logits_task1 = logits[:, :num_labels]
    logits_task2 = logits[:, num_labels:]

    if labels is not None:
        loss1 = token_loss(logits_task1, labels[:, 0], focal=focal_loss)
        loss2 = token_loss(logits_task2, labels[:, 1], focal=focal_loss)
        return loss1 + loss2
    return [logits_task1, logits_task2]


# ---------------------------------------------------------------------------
# Deterministic parameter construction (bf16 matmul weights, f32 vectors)
# ---------------------------------------------------------------------------

def init_params(key, vocab=50, max_pos=32, type_vocab=2, hidden=128,
                num_heads=4, intermediate=256, num_layers=2,
                num_labels=2, num_labels_task2=6):
    def w(k, shape):
        return jax.random.normal(k, shape, jnp.float32) * 0.02

    keys = iter(jax.random.split(key, 6 * num_layers + 6))
    ones_h = jnp.ones((hidden,), jnp.float32)
    zeros_h = jnp.zeros((hidden,), jnp.float32)

    p = {
        "num_heads": num_heads,
        "num_labels": num_labels,
        "word_emb": w(next(keys), (vocab, hidden)),
        "pos_emb": w(next(keys), (max_pos, hidden)),
        "type_emb": w(next(keys), (type_vocab, hidden)),
        "emb_ln": jnp.stack([ones_h, zeros_h]),                  # [2, H]
    }

    wqkv, bqkv, wo, avec, w1, b1, w2, fvec = [], [], [], [], [], [], [], []
    for _ in range(num_layers):
        wqkv.append(jnp.concatenate([w(next(keys), (hidden, hidden)),
                                     w(next(keys), (hidden, hidden)),
                                     w(next(keys), (hidden, hidden))], axis=1))
        bqkv.append(jnp.zeros((1, 3 * hidden), jnp.float32))
        wo.append(w(next(keys), (hidden, hidden)))
        avec.append(jnp.stack([zeros_h, ones_h, zeros_h]))       # bo, ln1_g, ln1_b
        w1.append(w(next(keys), (hidden, intermediate)))
        b1.append(jnp.zeros((1, intermediate), jnp.float32))
        w2.append(w(next(keys), (intermediate, hidden)))
        fvec.append(jnp.stack([zeros_h, ones_h, zeros_h]))       # b_ff2, ln2_g, ln2_b

    p["wqkv"] = jnp.stack(wqkv).astype(jnp.bfloat16)             # [L, H, 3H]
    p["bqkv"] = jnp.stack(bqkv)                                  # [L, 1, 3H]
    p["wo"] = jnp.stack(wo).astype(jnp.bfloat16)                 # [L, H, H]
    p["attn_vec"] = jnp.stack(avec)                              # [L, 3, H]
    p["w_ff1"] = jnp.stack(w1).astype(jnp.bfloat16)              # [L, H, I]
    p["b_ff1"] = jnp.stack(b1)                                   # [L, 1, I]
    p["w_ff2"] = jnp.stack(w2).astype(jnp.bfloat16)              # [L, I, H]
    p["ffn_vec"] = jnp.stack(fvec)                               # [L, 3, H]

    p["pool_w"] = w(next(keys), (hidden, hidden)).astype(jnp.bfloat16)
    p["pool_b"] = jnp.zeros((1, hidden), jnp.float32)
    cls1_w = w(next(keys), (hidden, num_labels))
    cls2_w = w(next(keys), (hidden, num_labels_task2))
    p["head_w"] = jnp.concatenate([cls1_w, cls2_w], axis=1).astype(jnp.bfloat16)
    p["head_b"] = jnp.zeros((1, num_labels + num_labels_task2), jnp.float32)
    return p


# ---------------------------------------------------------------------------
# Main
# ---------------------------------------------------------------------------

if __name__ == "__main__":
    key = jax.random.PRNGKey(0)
    kp, ki, kl1, kl2 = jax.random.split(key, 4)

    B, S = 2, 8
    params = init_params(kp)

    input_id = jax.random.randint(ki, (B, S), 0, 50, dtype=jnp.int32)
    mask_id = jnp.concatenate(
        [jnp.ones((B, S - 2), jnp.int32), jnp.zeros((B, 2), jnp.int32)], axis=1)
    token_type_id = jnp.zeros((B, S), jnp.int32)
    labels = jnp.stack(
        [jax.random.randint(kl1, (B,), 0, 2, dtype=jnp.int32),
         jax.random.randint(kl2, (B,), 0, 6, dtype=jnp.int32)], axis=1)

    # inference path (labels=None) -> [logits_task1, logits_task2]
    logits1, logits2 = forward(params, input_id, mask_id, token_type_id)
    jax.block_until_ready(logits1)
    jax.block_until_ready(logits2)
    assert logits1.shape == (B, 2) and logits2.shape == (B, 6)

    # training path (labels given) -> scalar loss (CE and Focal variants)
    loss_ce = forward(params, input_id, mask_id, token_type_id, labels=labels)
    loss_fl = forward(params, input_id, mask_id, token_type_id, labels=labels,
                      focal_loss=True)
    jax.block_until_ready(loss_ce)
    jax.block_until_ready(loss_fl)
    assert bool(jnp.isfinite(loss_ce)) and bool(jnp.isfinite(loss_fl))

    print("KERNEL_OK")
</pallas_src>

<mosaic_0001>
module attributes {stable_mosaic.version = 11 : i64} {
  func.func @_encoder_kernel(%arg0: i32, %arg1: i32, %arg2: memref<2x8x128xbf16, #tpu.memory_space<vmem>>, %arg3: memref<2x1x8xf32, #tpu.memory_space<vmem>>, %arg4: memref<2x128xf32, #tpu.memory_space<vmem>>, %arg5: memref<1x128x384xbf16, #tpu.memory_space<vmem>>, %arg6: memref<1x1x384xf32, #tpu.memory_space<vmem>>, %arg7: memref<1x128x128xbf16, #tpu.memory_space<vmem>>, %arg8: memref<1x3x128xf32, #tpu.memory_space<vmem>>, %arg9: memref<1x128x256xbf16, #tpu.memory_space<vmem>>, %arg10: memref<1x1x256xf32, #tpu.memory_space<vmem>>, %arg11: memref<1x256x128xbf16, #tpu.memory_space<vmem>>, %arg12: memref<1x3x128xf32, #tpu.memory_space<vmem>>, %arg13: memref<2x8x128xbf16, #tpu.memory_space<vmem>>, %arg14: memref<16x128xf32, #tpu.memory_space<vmem>>, %arg15: memref<16x128xf32, #tpu.memory_space<vmem>>) attributes {dimension_semantics = [#tpu.dimension_semantics<parallel>, #tpu.dimension_semantics<arbitrary>], iteration_bounds = array<i64: 1, 2>, scalar_prefetch = 0 : i64, scratch_operands = 2 : i64, tpu.core_type = #tpu.core_type<tc>, window_params = [{transform_indices = @transform_0, window_bounds = array<i64: 2, 8, 128>}, {transform_indices = @transform_1, window_bounds = array<i64: 2, 1, 8>}, {pipeline_mode = #tpu.pipeline_mode<synchronous>, transform_indices = @transform_2, window_bounds = array<i64: 2, 128>}, {transform_indices = @transform_3, window_bounds = array<i64: 1, 128, 384>}, {transform_indices = @transform_4, window_bounds = array<i64: 1, 1, 384>}, {transform_indices = @transform_5, window_bounds = array<i64: 1, 128, 128>}, {transform_indices = @transform_6, window_bounds = array<i64: 1, 3, 128>}, {transform_indices = @transform_7, window_bounds = array<i64: 1, 128, 256>}, {transform_indices = @transform_8, window_bounds = array<i64: 1, 1, 256>}, {transform_indices = @transform_9, window_bounds = array<i64: 1, 256, 128>}, {transform_indices = @transform_10, window_bounds = array<i64: 1, 3, 128>}, {transform_indices = @transform_11, window_bounds = array<i64: 2, 8, 128>}]} {
    %c0_i32 = arith.constant 0 : i32
    %0 = arith.cmpi eq, %arg1, %c0_i32 : i32
    %1 = arith.extui %0 : i1 to i32
    %c0_i32_0 = arith.constant 0 : i32
    %2 = arith.cmpi ne, %1, %c0_i32_0 : i32
    scf.if %2 {
      %c0_82 = arith.constant 0 : index
      %c0_83 = arith.constant 0 : index
      %c0_84 = arith.constant 0 : index
      %222 = vector.load %arg2[%c0_82, %c0_83, %c0_84] : memref<2x8x128xbf16, #tpu.memory_space<vmem>>, vector<2x8x128xbf16>
      %223 = arith.extf %222 : vector<2x8x128xbf16> to vector<2x8x128xf32>
      %224 = vector.shape_cast %223 : vector<2x8x128xf32> to vector<16x128xf32>
      %c0_85 = arith.constant 0 : index
      %c0_86 = arith.constant 0 : index
      %225 = vector.load %arg4[%c0_85, %c0_86] : memref<2x128xf32, #tpu.memory_space<vmem>>, vector<2x128xf32>
      %226 = vector.extract_strided_slice %225 {offsets = [0, 0], sizes = [1, 128], strides = [1, 1]} : vector<2x128xf32> to vector<1x128xf32>
      %227 = vector.extract_strided_slice %225 {offsets = [1, 0], sizes = [1, 128], strides = [1, 1]} : vector<2x128xf32> to vector<1x128xf32>
      %cst_87 = arith.constant dense<0.000000e+00> : vector<16xf32>
      %228 = vector.multi_reduction <add>, %224, %cst_87 [1] : vector<16x128xf32> to vector<16xf32>
      %229 = vector.shape_cast %228 : vector<16xf32> to vector<16x1xf32>
      %cst_88 = arith.constant 1.280000e+02 : f32
      %230 = vector.broadcast %cst_88 : f32 to vector<16x1xf32>
      %231 = arith.divf %229, %230 : vector<16x1xf32>
      %232 = vector.broadcast %231 : vector<16x1xf32> to vector<16x128xf32>
      %233 = arith.subf %224, %232 : vector<16x128xf32>
      %234 = arith.mulf %233, %233 : vector<16x128xf32>
      %cst_89 = arith.constant dense<0.000000e+00> : vector<16xf32>
      %235 = vector.multi_reduction <add>, %234, %cst_89 [1] : vector<16x128xf32> to vector<16xf32>
      %236 = vector.shape_cast %235 : vector<16xf32> to vector<16x1xf32>
      %cst_90 = arith.constant 1.280000e+02 : f32
      %237 = vector.broadcast %cst_90 : f32 to vector<16x1xf32>
      %238 = arith.divf %236, %237 : vector<16x1xf32>
      %239 = vector.broadcast %231 : vector<16x1xf32> to vector<16x128xf32>
      %240 = arith.subf %224, %239 : vector<16x128xf32>
      %cst_91 = arith.constant 9.99999996E-13 : f32
      %241 = vector.broadcast %cst_91 : f32 to vector<16x1xf32>
      %242 = arith.addf %238, %241 : vector<16x1xf32>
      %243 = math.rsqrt %242 : vector<16x1xf32>
      %244 = vector.broadcast %243 : vector<16x1xf32> to vector<16x128xf32>
      %245 = arith.mulf %240, %244 : vector<16x128xf32>
      %246 = vector.broadcast %226 : vector<1x128xf32> to vector<16x128xf32>
      %247 = arith.mulf %245, %246 : vector<16x128xf32>
      %248 = vector.broadcast %227 : vector<1x128xf32> to vector<16x128xf32>
      %249 = arith.addf %247, %248 : vector<16x128xf32>
      %c0_92 = arith.constant 0 : index
      %c0_93 = arith.constant 0 : index
      %250 = vector.load %arg14[%c0_92, %c0_93] : memref<16x128xf32, #tpu.memory_space<vmem>>, vector<16x128xf32>
      tpu.vector_store %arg14[%c0_92, %c0_93], %249 {strides = array<i32>} : memref<16x128xf32, #tpu.memory_space<vmem>>, vector<16x128xf32>,
    } else {
    }
    %c0 = arith.constant 0 : index
    %c0_1 = arith.constant 0 : index
    %3 = vector.load %arg14[%c0, %c0_1] : memref<16x128xf32, #tpu.memory_space<vmem>>, vector<16x128xf32>
    %4 = arith.truncf %3 : vector<16x128xf32> to vector<16x128xbf16>
    %c0_2 = arith.constant 0 : index
    %c0_3 = arith.constant 0 : index
    %c0_4 = arith.constant 0 : index
    %5 = vector.load %arg5[%c0_2, %c0_3, %c0_4] : memref<1x128x384xbf16, #tpu.memory_space<vmem>>, vector<1x128x384xbf16>
    %6 = vector.shape_cast %5 : vector<1x128x384xbf16> to vector<128x384xbf16>
    %cst = arith.constant dense<0.000000e+00> : vector<16x384xf32>
    %7 = tpu.matmul %4, %6, %cst {dimension_numbers = #tpu.dot_dimension_numbers<[1], [0], [0], [1], [0, 0, 1, 1], [], []>} : vector<16x128xbf16>, vector<128x384xbf16>, vector<16x384xf32> -> vector<16x384xf32>
    %c0_5 = arith.constant 0 : index
    %c0_6 = arith.constant 0 : index
    %c0_7 = arith.constant 0 : index
    %8 = vector.load %arg6[%c0_5, %c0_6, %c0_7] : memref<1x1x384xf32, #tpu.memory_space<vmem>>, vector<1x1x384xf32>
    %9 = vector.shape_cast %8 : vector<1x1x384xf32> to vector<1x384xf32>
    %10 = vector.broadcast %9 : vector<1x384xf32> to vector<16x384xf32>
    %11 = arith.addf %7, %10 : vector<16x384xf32>
    %c0_8 = arith.constant 0 : index
    %c0_9 = arith.constant 0 : index
    %c0_10 = arith.constant 0 : index
    %12 = vector.load %arg3[%c0_8, %c0_9, %c0_10] : memref<2x1x8xf32, #tpu.memory_space<vmem>>, vector<2x1x8xf32>
    %13 = vector.extract_strided_slice %11 {offsets = [0, 0], sizes = [16, 32], strides = [1, 1]} : vector<16x384xf32> to vector<16x32xf32>
    %14 = arith.truncf %13 : vector<16x32xf32> to vector<16x32xbf16>
    %15 = vector.shape_cast %14 : vector<16x32xbf16> to vector<2x8x32xbf16>
    %16 = vector.extract_strided_slice %11 {offsets = [0, 128], sizes = [16, 32], strides = [1, 1]} : vector<16x384xf32> to vector<16x32xf32>
    %17 = arith.truncf %16 : vector<16x32xf32> to vector<16x32xbf16>
    %18 = vector.shape_cast %17 : vector<16x32xbf16> to vector<2x8x32xbf16>
    %19 = vector.extract_strided_slice %11 {offsets = [0, 256], sizes = [16, 32], strides = [1, 1]} : vector<16x384xf32> to vector<16x32xf32>
    %20 = arith.truncf %19 : vector<16x32xf32> to vector<16x32xbf16>
    %21 = vector.shape_cast %20 : vector<16x32xbf16> to vector<2x8x32xbf16>
    "tpu.trace_start"() <{level = 10 : i32, message = "bqd,bkd->bqk"}> : () -> ()
    %cst_11 = arith.constant dense<0.000000e+00> : vector<2x8x8xf32>
    %22 = tpu.matmul %15, %18, %cst_11 {dimension_numbers = #tpu.dot_dimension_numbers<[2], [2], [1], [1], [0, 0, 0, 1, 1, 1], [0], [0]>} : vector<2x8x32xbf16>, vector<2x8x32xbf16>, vector<2x8x8xf32> -> vector<2x8x8xf32>
    "tpu.trace_stop"() : () -> ()
    %cst_12 = arith.constant 0.176776692 : f32
    %23 = vector.broadcast %cst_12 : f32 to vector<2x8x8xf32>
    %24 = arith.mulf %22, %23 : vector<2x8x8xf32>
    %25 = vector.broadcast %12 : vector<2x1x8xf32> to vector<2x8x8xf32>
    %26 = arith.addf %24, %25 : vector<2x8x8xf32>
    %cst_13 = arith.constant dense<0xFF800000> : vector<2x8xf32>
    %27 = vector.multi_reduction <maximumf>, %26, %cst_13 [2] : vector<2x8x8xf32> to vector<2x8xf32>
    %28 = vector.shape_cast %27 : vector<2x8xf32> to vector<2x8x1xf32>
    %29 = vector.broadcast %28 : vector<2x8x1xf32> to vector<2x8x8xf32>
    %30 = arith.subf %26, %29 : vector<2x8x8xf32>
    %31 = math.exp %30 : vector<2x8x8xf32>
    %cst_14 = arith.constant dense<0.000000e+00> : vector<2x8xf32>
    %32 = vector.multi_reduction <add>, %31, %cst_14 [2] : vector<2x8x8xf32> to vector<2x8xf32>
    %33 = vector.shape_cast %32 : vector<2x8xf32> to vector<2x8x1xf32>
    %34 = tpu.reciprocal %33 {approx = true} : vector<2x8x1xf32> -> vector<2x8x1xf32>
    %35 = vector.broadcast %34 : vector<2x8x1xf32> to vector<2x8x8xf32>
    %36 = arith.mulf %31, %35 : vector<2x8x8xf32>
    %37 = arith.truncf %36 : vector<2x8x8xf32> to vector<2x8x8xbf16>
    "tpu.trace_start"() <{level = 10 : i32, message = "bqk,bkd->bqd"}> : () -> ()
    %cst_15 = arith.constant dense<0.000000e+00> : vector<2x8x32xf32>
    %38 = tpu.matmul %37, %21, %cst_15 {dimension_numbers = #tpu.dot_dimension_numbers<[2], [1], [1], [2], [0, 0, 0, 1, 1, 2], [0], [0]>} : vector<2x8x8xbf16>, vector<2x8x32xbf16>, vector<2x8x32xf32> -> vector<2x8x32xf32>
    "tpu.trace_stop"() : () -> ()
    %39 = vector.shape_cast %38 : vector<2x8x32xf32> to vector<16x32xf32>
    %c0_16 = arith.constant 0 : index
    %c0_17 = arith.constant 0 : index
    %40 = vector.load %arg15[%c0_16, %c0_17] : memref<16x128xf32, #tpu.memory_space<vmem>>, vector<16x32xf32>
    tpu.vector_store %arg15[%c0_16, %c0_17], %39 {strides = array<i32>} : memref<16x128xf32, #tpu.memory_space<vmem>>, vector<16x32xf32>,
    %41 = vector.extract_strided_slice %11 {offsets = [0, 32], sizes = [16, 32], strides = [1, 1]} : vector<16x384xf32> to vector<16x32xf32>
    %42 = arith.truncf %41 : vector<16x32xf32> to vector<16x32xbf16>
    %43 = vector.shape_cast %42 : vector<16x32xbf16> to vector<2x8x32xbf16>
    %44 = vector.extract_strided_slice %11 {offsets = [0, 160], sizes = [16, 32], strides = [1, 1]} : vector<16x384xf32> to vector<16x32xf32>
    %45 = arith.truncf %44 : vector<16x32xf32> to vector<16x32xbf16>
    %46 = vector.shape_cast %45 : vector<16x32xbf16> to vector<2x8x32xbf16>
    %47 = vector.extract_strided_slice %11 {offsets = [0, 288], sizes = [16, 32], strides = [1, 1]} : vector<16x384xf32> to vector<16x32xf32>
    %48 = arith.truncf %47 : vector<16x32xf32> to vector<16x32xbf16>
    %49 = vector.shape_cast %48 : vector<16x32xbf16> to vector<2x8x32xbf16>
    "tpu.trace_start"() <{level = 10 : i32, message = "bqd,bkd->bqk"}> : () -> ()
    %cst_18 = arith.constant dense<0.000000e+00> : vector<2x8x8xf32>
    %50 = tpu.matmul %43, %46, %cst_18 {dimension_numbers = #tpu.dot_dimension_numbers<[2], [2], [1], [1], [0, 0, 0, 1, 1, 1], [0], [0]>} : vector<2x8x32xbf16>, vector<2x8x32xbf16>, vector<2x8x8xf32> -> vector<2x8x8xf32>
    "tpu.trace_stop"() : () -> ()
    %cst_19 = arith.constant 0.176776692 : f32
    %51 = vector.broadcast %cst_19 : f32 to vector<2x8x8xf32>
    %52 = arith.mulf %50, %51 : vector<2x8x8xf32>
    %53 = vector.broadcast %12 : vector<2x1x8xf32> to vector<2x8x8xf32>
    %54 = arith.addf %52, %53 : vector<2x8x8xf32>
    %cst_20 = arith.constant dense<0xFF800000> : vector<2x8xf32>
    %55 = vector.multi_reduction <maximumf>, %54, %cst_20 [2] : vector<2x8x8xf32> to vector<2x8xf32>
    %56 = vector.shape_cast %55 : vector<2x8xf32> to vector<2x8x1xf32>
    %57 = vector.broadcast %56 : vector<2x8x1xf32> to vector<2x8x8xf32>
    %58 = arith.subf %54, %57 : vector<2x8x8xf32>
    %59 = math.exp %58 : vector<2x8x8xf32>
    %cst_21 = arith.constant dense<0.000000e+00> : vector<2x8xf32>
    %60 = vector.multi_reduction <add>, %59, %cst_21 [2] : vector<2x8x8xf32> to vector<2x8xf32>
    %61 = vector.shape_cast %60 : vector<2x8xf32> to vector<2x8x1xf32>
    %62 = tpu.reciprocal %61 {approx = true} : vector<2x8x1xf32> -> vector<2x8x1xf32>
    %63 = vector.broadcast %62 : vector<2x8x1xf32> to vector<2x8x8xf32>
    %64 = arith.mulf %59, %63 : vector<2x8x8xf32>
    %65 = arith.truncf %64 : vector<2x8x8xf32> to vector<2x8x8xbf16>
    "tpu.trace_start"() <{level = 10 : i32, message = "bqk,bkd->bqd"}> : () -> ()
    %cst_22 = arith.constant dense<0.000000e+00> : vector<2x8x32xf32>
    %66 = tpu.matmul %65, %49, %cst_22 {dimension_numbers = #tpu.dot_dimension_numbers<[2], [1], [1], [2], [0, 0, 0, 1, 1, 2], [0], [0]>} : vector<2x8x8xbf16>, vector<2x8x32xbf16>, vector<2x8x32xf32> -> vector<2x8x32xf32>
    "tpu.trace_stop"() : () -> ()
    %67 = vector.shape_cast %66 : vector<2x8x32xf32> to vector<16x32xf32>
    %c0_23 = arith.constant 0 : index
    %c32 = arith.constant 32 : index
    %68 = vector.load %arg15[%c0_23, %c32] : memref<16x128xf32, #tpu.memory_space<vmem>>, vector<16x32xf32>
    tpu.vector_store %arg15[%c0_23, %c32], %67 {strides = array<i32>} : memref<16x128xf32, #tpu.memory_space<vmem>>, vector<16x32xf32>,
    %69 = vector.extract_strided_slice %11 {offsets = [0, 64], sizes = [16, 32], strides = [1, 1]} : vector<16x384xf32> to vector<16x32xf32>
    %70 = arith.truncf %69 : vector<16x32xf32> to vector<16x32xbf16>
    %71 = vector.shape_cast %70 : vector<16x32xbf16> to vector<2x8x32xbf16>
    %72 = vector.extract_strided_slice %11 {offsets = [0, 192], sizes = [16, 32], strides = [1, 1]} : vector<16x384xf32> to vector<16x32xf32>
    %73 = arith.truncf %72 : vector<16x32xf32> to vector<16x32xbf16>
    %74 = vector.shape_cast %73 : vector<16x32xbf16> to vector<2x8x32xbf16>
    %75 = vector.extract_strided_slice %11 {offsets = [0, 320], sizes = [16, 32], strides = [1, 1]} : vector<16x384xf32> to vector<16x32xf32>
    %76 = arith.truncf %75 : vector<16x32xf32> to vector<16x32xbf16>
    %77 = vector.shape_cast %76 : vector<16x32xbf16> to vector<2x8x32xbf16>
    "tpu.trace_start"() <{level = 10 : i32, message = "bqd,bkd->bqk"}> : () -> ()
    %cst_24 = arith.constant dense<0.000000e+00> : vector<2x8x8xf32>
    %78 = tpu.matmul %71, %74, %cst_24 {dimension_numbers = #tpu.dot_dimension_numbers<[2], [2], [1], [1], [0, 0, 0, 1, 1, 1], [0], [0]>} : vector<2x8x32xbf16>, vector<2x8x32xbf16>, vector<2x8x8xf32> -> vector<2x8x8xf32>
    "tpu.trace_stop"() : () -> ()
    %cst_25 = arith.constant 0.176776692 : f32
    %79 = vector.broadcast %cst_25 : f32 to vector<2x8x8xf32>
    %80 = arith.mulf %78, %79 : vector<2x8x8xf32>
    %81 = vector.broadcast %12 : vector<2x1x8xf32> to vector<2x8x8xf32>
    %82 = arith.addf %80, %81 : vector<2x8x8xf32>
    %cst_26 = arith.constant dense<0xFF800000> : vector<2x8xf32>
    %83 = vector.multi_reduction <maximumf>, %82, %cst_26 [2] : vector<2x8x8xf32> to vector<2x8xf32>
    %84 = vector.shape_cast %83 : vector<2x8xf32> to vector<2x8x1xf32>
    %85 = vector.broadcast %84 : vector<2x8x1xf32> to vector<2x8x8xf32>
    %86 = arith.subf %82, %85 : vector<2x8x8xf32>
    %87 = math.exp %86 : vector<2x8x8xf32>
    %cst_27 = arith.constant dense<0.000000e+00> : vector<2x8xf32>
    %88 = vector.multi_reduction <add>, %87, %cst_27 [2] : vector<2x8x8xf32> to vector<2x8xf32>
    %89 = vector.shape_cast %88 : vector<2x8xf32> to vector<2x8x1xf32>
    %90 = tpu.reciprocal %89 {approx = true} : vector<2x8x1xf32> -> vector<2x8x1xf32>
    %91 = vector.broadcast %90 : vector<2x8x1xf32> to vector<2x8x8xf32>
    %92 = arith.mulf %87, %91 : vector<2x8x8xf32>
    %93 = arith.truncf %92 : vector<2x8x8xf32> to vector<2x8x8xbf16>
    "tpu.trace_start"() <{level = 10 : i32, message = "bqk,bkd->bqd"}> : () -> ()
    %cst_28 = arith.constant dense<0.000000e+00> : vector<2x8x32xf32>
    %94 = tpu.matmul %93, %77, %cst_28 {dimension_numbers = #tpu.dot_dimension_numbers<[2], [1], [1], [2], [0, 0, 0, 1, 1, 2], [0], [0]>} : vector<2x8x8xbf16>, vector<2x8x32xbf16>, vector<2x8x32xf32> -> vector<2x8x32xf32>
    "tpu.trace_stop"() : () -> ()
    %95 = vector.shape_cast %94 : vector<2x8x32xf32> to vector<16x32xf32>
    %c0_29 = arith.constant 0 : index
    %c64 = arith.constant 64 : index
    %96 = vector.load %arg15[%c0_29, %c64] : memref<16x128xf32, #tpu.memory_space<vmem>>, vector<16x32xf32>
    tpu.vector_store %arg15[%c0_29, %c64], %95 {strides = array<i32>} : memref<16x128xf32, #tpu.memory_space<vmem>>, vector<16x32xf32>,
    %97 = vector.extract_strided_slice %11 {offsets = [0, 96], sizes = [16, 32], strides = [1, 1]} : vector<16x384xf32> to vector<16x32xf32>
    %98 = arith.truncf %97 : vector<16x32xf32> to vector<16x32xbf16>
    %99 = vector.shape_cast %98 : vector<16x32xbf16> to vector<2x8x32xbf16>
    %100 = vector.extract_strided_slice %11 {offsets = [0, 224], sizes = [16, 32], strides = [1, 1]} : vector<16x384xf32> to vector<16x32xf32>
    %101 = arith.truncf %100 : vector<16x32xf32> to vector<16x32xbf16>
    %102 = vector.shape_cast %101 : vector<16x32xbf16> to vector<2x8x32xbf16>
    %103 = vector.extract_strided_slice %11 {offsets = [0, 352], sizes = [16, 32], strides = [1, 1]} : vector<16x384xf32> to vector<16x32xf32>
    %104 = arith.truncf %103 : vector<16x32xf32> to vector<16x32xbf16>
    %105 = vector.shape_cast %104 : vector<16x32xbf16> to vector<2x8x32xbf16>
    "tpu.trace_start"() <{level = 10 : i32, message = "bqd,bkd->bqk"}> : () -> ()
    %cst_30 = arith.constant dense<0.000000e+00> : vector<2x8x8xf32>
    %106 = tpu.matmul %99, %102, %cst_30 {dimension_numbers = #tpu.dot_dimension_numbers<[2], [2], [1], [1], [0, 0, 0, 1, 1, 1], [0], [0]>} : vector<2x8x32xbf16>, vector<2x8x32xbf16>, vector<2x8x8xf32> -> vector<2x8x8xf32>
    "tpu.trace_stop"() : () -> ()
    %cst_31 = arith.constant 0.176776692 : f32
    %107 = vector.broadcast %cst_31 : f32 to vector<2x8x8xf32>
    %108 = arith.mulf %106, %107 : vector<2x8x8xf32>
    %109 = vector.broadcast %12 : vector<2x1x8xf32> to vector<2x8x8xf32>
    %110 = arith.addf %108, %109 : vector<2x8x8xf32>
    %cst_32 = arith.constant dense<0xFF800000> : vector<2x8xf32>
    %111 = vector.multi_reduction <maximumf>, %110, %cst_32 [2] : vector<2x8x8xf32> to vector<2x8xf32>
    %112 = vector.shape_cast %111 : vector<2x8xf32> to vector<2x8x1xf32>
    %113 = vector.broadcast %112 : vector<2x8x1xf32> to vector<2x8x8xf32>
    %114 = arith.subf %110, %113 : vector<2x8x8xf32>
    %115 = math.exp %114 : vector<2x8x8xf32>
    %cst_33 = arith.constant dense<0.000000e+00> : vector<2x8xf32>
    %116 = vector.multi_reduction <add>, %115, %cst_33 [2] : vector<2x8x8xf32> to vector<2x8xf32>
    %117 = vector.shape_cast %116 : vector<2x8xf32> to vector<2x8x1xf32>
    %118 = tpu.reciprocal %117 {approx = true} : vector<2x8x1xf32> -> vector<2x8x1xf32>
    %119 = vector.broadcast %118 : vector<2x8x1xf32> to vector<2x8x8xf32>
    %120 = arith.mulf %115, %119 : vector<2x8x8xf32>
    %121 = arith.truncf %120 : vector<2x8x8xf32> to vector<2x8x8xbf16>
    "tpu.trace_start"() <{level = 10 : i32, message = "bqk,bkd->bqd"}> : () -> ()
    %cst_34 = arith.constant dense<0.000000e+00> : vector<2x8x32xf32>
    %122 = tpu.matmul %121, %105, %cst_34 {dimension_numbers = #tpu.dot_dimension_numbers<[2], [1], [1], [2], [0, 0, 0, 1, 1, 2], [0], [0]>} : vector<2x8x8xbf16>, vector<2x8x32xbf16>, vector<2x8x32xf32> -> vector<2x8x32xf32>
    "tpu.trace_stop"() : () -> ()
    %123 = vector.shape_cast %122 : vector<2x8x32xf32> to vector<16x32xf32>
    %c0_35 = arith.constant 0 : index
    %c96 = arith.constant 96 : index
    %124 = vector.load %arg15[%c0_35, %c96] : memref<16x128xf32, #tpu.memory_space<vmem>>, vector<16x32xf32>
    tpu.vector_store %arg15[%c0_35, %c96], %123 {strides = array<i32>} : memref<16x128xf32, #tpu.memory_space<vmem>>, vector<16x32xf32>,
    %c0_36 = arith.constant 0 : index
    %c0_37 = arith.constant 0 : index
    %c0_38 = arith.constant 0 : index
    %125 = vector.load %arg8[%c0_36, %c0_37, %c0_38] : memref<1x3x128xf32, #tpu.memory_space<vmem>>, vector<1x3x128xf32>
    %126 = vector.shape_cast %125 : vector<1x3x128xf32> to vector<3x128xf32>
    %c0_39 = arith.constant 0 : index
    %c0_40 = arith.constant 0 : index
    %127 = vector.load %arg15[%c0_39, %c0_40] : memref<16x128xf32, #tpu.memory_space<vmem>>, vector<16x128xf32>
    %128 = arith.truncf %127 : vector<16x128xf32> to vector<16x128xbf16>
    %c0_41 = arith.constant 0 : index
    %c0_42 = arith.constant 0 : index
    %c0_43 = arith.constant 0 : index
    %129 = vector.load %arg7[%c0_41, %c0_42, %c0_43] : memref<1x128x128xbf16, #tpu.memory_space<vmem>>, vector<1x128x128xbf16>
    %130 = vector.shape_cast %129 : vector<1x128x128xbf16> to vector<128x128xbf16>
    %cst_44 = arith.constant dense<0.000000e+00> : vector<16x128xf32>
    %131 = tpu.matmul %128, %130, %cst_44 {dimension_numbers = #tpu.dot_dimension_numbers<[1], [0], [0], [1], [0, 0, 1, 1], [], []>} : vector<16x128xbf16>, vector<128x128xbf16>, vector<16x128xf32> -> vector<16x128xf32>
    %132 = vector.extract_strided_slice %126 {offsets = [0, 0], sizes = [1, 128], strides = [1, 1]} : vector<3x128xf32> to vector<1x128xf32>
    %133 = vector.broadcast %132 : vector<1x128xf32> to vector<16x128xf32>
    %134 = arith.addf %131, %133 : vector<16x128xf32>
    %c0_45 = arith.constant 0 : index
    %c0_46 = arith.constant 0 : index
    %135 = vector.load %arg14[%c0_45, %c0_46] : memref<16x128xf32, #tpu.memory_space<vmem>>, vector<16x128xf32>
    %136 = arith.addf %134, %135 : vector<16x128xf32>
    %137 = vector.extract_strided_slice %126 {offsets = [1, 0], sizes = [1, 128], strides = [1, 1]} : vector<3x128xf32> to vector<1x128xf32>
    %138 = vector.extract_strided_slice %126 {offsets = [2, 0], sizes = [1, 128], strides = [1, 1]} : vector<3x128xf32> to vector<1x128xf32>
    %cst_47 = arith.constant dense<0.000000e+00> : vector<16xf32>
    %139 = vector.multi_reduction <add>, %136, %cst_47 [1] : vector<16x128xf32> to vector<16xf32>
    %140 = vector.shape_cast %139 : vector<16xf32> to vector<16x1xf32>
    %cst_48 = arith.constant 1.280000e+02 : f32
    %141 = vector.broadcast %cst_48 : f32 to vector<16x1xf32>
    %142 = arith.divf %140, %141 : vector<16x1xf32>
    %143 = vector.broadcast %142 : vector<16x1xf32> to vector<16x128xf32>
    %144 = arith.subf %136, %143 : vector<16x128xf32>
    %145 = arith.mulf %144, %144 : vector<16x128xf32>
    %cst_49 = arith.constant dense<0.000000e+00> : vector<16xf32>
    %146 = vector.multi_reduction <add>, %145, %cst_49 [1] : vector<16x128xf32> to vector<16xf32>
    %147 = vector.shape_cast %146 : vector<16xf32> to vector<16x1xf32>
    %cst_50 = arith.constant 1.280000e+02 : f32
    %148 = vector.broadcast %cst_50 : f32 to vector<16x1xf32>
    %149 = arith.divf %147, %148 : vector<16x1xf32>
    %150 = vector.broadcast %142 : vector<16x1xf32> to vector<16x128xf32>
    %151 = arith.subf %136, %150 : vector<16x128xf32>
    %cst_51 = arith.constant 9.99999996E-13 : f32
    %152 = vector.broadcast %cst_51 : f32 to vector<16x1xf32>
    %153 = arith.addf %149, %152 : vector<16x1xf32>
    %154 = math.rsqrt %153 : vector<16x1xf32>
    %155 = vector.broadcast %154 : vector<16x1xf32> to vector<16x128xf32>
    %156 = arith.mulf %151, %155 : vector<16x128xf32>
    %157 = vector.broadcast %137 : vector<1x128xf32> to vector<16x128xf32>
    %158 = arith.mulf %156, %157 : vector<16x128xf32>
    %159 = vector.broadcast %138 : vector<1x128xf32> to vector<16x128xf32>
    %160 = arith.addf %158, %159 : vector<16x128xf32>
    %c0_52 = arith.constant 0 : index
    %c0_53 = arith.constant 0 : index
    %161 = vector.load %arg14[%c0_52, %c0_53] : memref<16x128xf32, #tpu.memory_space<vmem>>, vector<16x128xf32>
    tpu.vector_store %arg14[%c0_52, %c0_53], %160 {strides = array<i32>} : memref<16x128xf32, #tpu.memory_space<vmem>>, vector<16x128xf32>,
    %162 = arith.truncf %160 : vector<16x128xf32> to vector<16x128xbf16>
    %c0_54 = arith.constant 0 : index
    %c0_55 = arith.constant 0 : index
    %c0_56 = arith.constant 0 : index
    %163 = vector.load %arg9[%c0_54, %c0_55, %c0_56] : memref<1x128x256xbf16, #tpu.memory_space<vmem>>, vector<1x128x256xbf16>
    %164 = vector.shape_cast %163 : vector<1x128x256xbf16> to vector<128x256xbf16>
    %cst_57 = arith.constant dense<0.000000e+00> : vector<16x256xf32>
    %165 = tpu.matmul %162, %164, %cst_57 {dimension_numbers = #tpu.dot_dimension_numbers<[1], [0], [0], [1], [0, 0, 1, 1], [], []>} : vector<16x128xbf16>, vector<128x256xbf16>, vector<16x256xf32> -> vector<16x256xf32>
    %c0_58 = arith.constant 0 : index
    %c0_59 = arith.constant 0 : index
    %c0_60 = arith.constant 0 : index
    %166 = vector.load %arg10[%c0_58, %c0_59, %c0_60] : memref<1x1x256xf32, #tpu.memory_space<vmem>>, vector<1x1x256xf32>
    %167 = vector.shape_cast %166 : vector<1x1x256xf32> to vector<1x256xf32>
    %168 = vector.broadcast %167 : vector<1x256xf32> to vector<16x256xf32>
    %169 = arith.addf %165, %168 : vector<16x256xf32>
    %cst_61 = arith.constant 5.000000e-01 : f32
    %170 = vector.broadcast %cst_61 : f32 to vector<16x256xf32>
    %171 = arith.mulf %170, %169 : vector<16x256xf32>
    %cst_62 = arith.constant 4.471500e-02 : f32
    %172 = vector.broadcast %cst_62 : f32 to vector<16x256xf32>
    %173 = arith.mulf %172, %169 : vector<16x256xf32>
    %174 = arith.mulf %173, %169 : vector<16x256xf32>
    %175 = arith.mulf %174, %169 : vector<16x256xf32>
    %176 = arith.addf %169, %175 : vector<16x256xf32>
    %cst_63 = arith.constant 0.797884583 : f32
    %177 = vector.broadcast %cst_63 : f32 to vector<16x256xf32>
    %178 = arith.mulf %177, %176 : vector<16x256xf32>
    %179 = math.tanh %178 : vector<16x256xf32>
    %cst_64 = arith.constant 1.000000e+00 : f32
    %180 = vector.broadcast %cst_64 : f32 to vector<16x256xf32>
    %181 = arith.addf %180, %179 : vector<16x256xf32>
    %182 = arith.mulf %171, %181 : vector<16x256xf32>
    %c0_65 = arith.constant 0 : index
    %c0_66 = arith.constant 0 : index
    %c0_67 = arith.constant 0 : index
    %183 = vector.load %arg12[%c0_65, %c0_66, %c0_67] : memref<1x3x128xf32, #tpu.memory_space<vmem>>, vector<1x3x128xf32>
    %184 = vector.shape_cast %183 : vector<1x3x128xf32> to vector<3x128xf32>
    %185 = arith.truncf %182 : vector<16x256xf32> to vector<16x256xbf16>
    %c0_68 = arith.constant 0 : index
    %c0_69 = arith.constant 0 : index
    %c0_70 = arith.constant 0 : index
    %186 = vector.load %arg11[%c0_68, %c0_69, %c0_70] : memref<1x256x128xbf16, #tpu.memory_space<vmem>>, vector<1x256x128xbf16>
    %187 = vector.shape_cast %186 : vector<1x256x128xbf16> to vector<256x128xbf16>
    %cst_71 = arith.constant dense<0.000000e+00> : vector<16x128xf32>
    %188 = tpu.matmul %185, %187, %cst_71 {dimension_numbers = #tpu.dot_dimension_numbers<[1], [0], [0], [1], [0, 0, 1, 1], [], []>} : vector<16x256xbf16>, vector<256x128xbf16>, vector<16x128xf32> -> vector<16x128xf32>
    %189 = vector.extract_strided_slice %184 {offsets = [0, 0], sizes = [1, 128], strides = [1, 1]} : vector<3x128xf32> to vector<1x128xf32>
    %190 = vector.broadcast %189 : vector<1x128xf32> to vector<16x128xf32>
    %191 = arith.addf %188, %190 : vector<16x128xf32>
    %c0_72 = arith.constant 0 : index
    %c0_73 = arith.constant 0 : index
    %192 = vector.load %arg14[%c0_72, %c0_73] : memref<16x128xf32, #tpu.memory_space<vmem>>, vector<16x128xf32>
    %193 = arith.addf %191, %192 : vector<16x128xf32>
    %194 = vector.extract_strided_slice %184 {offsets = [1, 0], sizes = [1, 128], strides = [1, 1]} : vector<3x128xf32> to vector<1x128xf32>
    %195 = vector.extract_strided_slice %184 {offsets = [2, 0], sizes = [1, 128], strides = [1, 1]} : vector<3x128xf32> to vector<1x128xf32>
    %cst_74 = arith.constant dense<0.000000e+00> : vector<16xf32>
    %196 = vector.multi_reduction <add>, %193, %cst_74 [1] : vector<16x128xf32> to vector<16xf32>
    %197 = vector.shape_cast %196 : vector<16xf32> to vector<16x1xf32>
    %cst_75 = arith.constant 1.280000e+02 : f32
    %198 = vector.broadcast %cst_75 : f32 to vector<16x1xf32>
    %199 = arith.divf %197, %198 : vector<16x1xf32>
    %200 = vector.broadcast %199 : vector<16x1xf32> to vector<16x128xf32>
    %201 = arith.subf %193, %200 : vector<16x128xf32>
    %202 = arith.mulf %201, %201 : vector<16x128xf32>
    %cst_76 = arith.constant dense<0.000000e+00> : vector<16xf32>
    %203 = vector.multi_reduction <add>, %202, %cst_76 [1] : vector<16x128xf32> to vector<16xf32>
    %204 = vector.shape_cast %203 : vector<16xf32> to vector<16x1xf32>
    %cst_77 = arith.constant 1.280000e+02 : f32
    %205 = vector.broadcast %cst_77 : f32 to vector<16x1xf32>
    %206 = arith.divf %204, %205 : vector<16x1xf32>
    %207 = vector.broadcast %199 : vector<16x1xf32> to vector<16x128xf32>
    %208 = arith.subf %193, %207 : vector<16x128xf32>
    %cst_78 = arith.constant 9.99999996E-13 : f32
    %209 = vector.broadcast %cst_78 : f32 to vector<16x1xf32>
    %210 = arith.addf %206, %209 : vector<16x1xf32>
    %211 = math.rsqrt %210 : vector<16x1xf32>
    %212 = vector.broadcast %211 : vector<16x1xf32> to vector<16x128xf32>
    %213 = arith.mulf %208, %212 : vector<16x128xf32>
    %214 = vector.broadcast %194 : vector<1x128xf32> to vector<16x128xf32>
    %215 = arith.mulf %213, %214 : vector<16x128xf32>
    %216 = vector.broadcast %195 : vector<1x128xf32> to vector<16x128xf32>
    %217 = arith.addf %215, %216 : vector<16x128xf32>
    %c0_79 = arith.constant 0 : index
    %c0_80 = arith.constant 0 : index
    %218 = vector.load %arg14[%c0_79, %c0_80] : memref<16x128xf32, #tpu.memory_space<vmem>>, vector<16x128xf32>
    tpu.vector_store %arg14[%c0_79, %c0_80], %217 {strides = array<i32>} : memref<16x128xf32, #tpu.memory_space<vmem>>, vector<16x128xf32>,
    %c1_i32 = arith.constant 1 : i32
    %219 = arith.cmpi eq, %arg1, %c1_i32 : i32
    %220 = arith.extui %219 : i1 to i32
    %c0_i32_81 = arith.constant 0 : i32
    %221 = arith.cmpi ne, %220, %c0_i32_81 : i32
    scf.if %221 {
      %222 = vector.shape_cast %217 : vector<16x128xf32> to vector<2x8x128xf32>
      %223 = arith.truncf %222 : vector<2x8x128xf32> to vector<2x8x128xbf16>
      %c0_82 = arith.constant 0 : index
      %c0_83 = arith.constant 0 : index
      %c0_84 = arith.constant 0 : index
      %224 = vector.load %arg13[%c0_82, %c0_83, %c0_84] : memref<2x8x128xbf16, #tpu.memory_space<vmem>>, vector<2x8x128xbf16>
      tpu.vector_store %arg13[%c0_82, %c0_83, %c0_84], %223 {strides = array<i32>} : memref<2x8x128xbf16, #tpu.memory_space<vmem>>, vector<2x8x128xbf16>,
    } else {
    }
    return
  }
  func.func @transform_0(%arg0: i32, %arg1: i32) -> (i32, i32, i32) {
    %c0_i32 = arith.constant 0 : i32
    %c0_i32_0 = arith.constant 0 : i32
    %c0_i32_1 = arith.constant 0 : i32
    return %arg0, %c0_i32, %c0_i32_0 : i32, i32, i32
  }
  func.func @transform_1(%arg0: i32, %arg1: i32) -> (i32, i32, i32) {
    %c0_i32 = arith.constant 0 : i32
    %c0_i32_0 = arith.constant 0 : i32
    %c0_i32_1 = arith.constant 0 : i32
    return %arg0, %c0_i32, %c0_i32_0 : i32, i32, i32
  }
  func.func @transform_2(%arg0: i32, %arg1: i32) -> (i32, i32) {
    %c0_i32 = arith.constant 0 : i32
    %c0_i32_0 = arith.constant 0 : i32
    %c0_i32_1 = arith.constant 0 : i32
    return %c0_i32, %c0_i32_0 : i32, i32
  }
  func.func @transform_3(%arg0: i32, %arg1: i32) -> (i32, i32, i32) {
    %c0_i32 = arith.constant 0 : i32
    %c0_i32_0 = arith.constant 0 : i32
    %c0_i32_1 = arith.constant 0 : i32
    return %arg1, %c0_i32, %c0_i32_0 : i32, i32, i32
  }
  func.func @transform_4(%arg0: i32, %arg1: i32) -> (i32, i32, i32) {
    %c0_i32 = arith.constant 0 : i32
    %c0_i32_0 = arith.constant 0 : i32
    %c0_i32_1 = arith.constant 0 : i32
    return %arg1, %c0_i32, %c0_i32_0 : i32, i32, i32
  }
  func.func @transform_5(%arg0: i32, %arg1: i32) -> (i32, i32, i32) {
    %c0_i32 = arith.constant 0 : i32
    %c0_i32_0 = arith.constant 0 : i32
    %c0_i32_1 = arith.constant 0 : i32
    return %arg1, %c0_i32, %c0_i32_0 : i32, i32, i32
  }
  func.func @transform_6(%arg0: i32, %arg1: i32) -> (i32, i32, i32) {
    %c0_i32 = arith.constant 0 : i32
    %c0_i32_0 = arith.constant 0 : i32
    %c0_i32_1 = arith.constant 0 : i32
    return %arg1, %c0_i32, %c0_i32_0 : i32, i32, i32
  }
  func.func @transform_7(%arg0: i32, %arg1: i32) -> (i32, i32, i32) {
    %c0_i32 = arith.constant 0 : i32
    %c0_i32_0 = arith.constant 0 : i32
    %c0_i32_1 = arith.constant 0 : i32
    return %arg1, %c0_i32, %c0_i32_0 : i32, i32, i32
  }
  func.func @transform_8(%arg0: i32, %arg1: i32) -> (i32, i32, i32) {
    %c0_i32 = arith.constant 0 : i32
    %c0_i32_0 = arith.constant 0 : i32
    %c0_i32_1 = arith.constant 0 : i32
    return %arg1, %c0_i32, %c0_i32_0 : i32, i32, i32
  }
  func.func @transform_9(%arg0: i32, %arg1: i32) -> (i32, i32, i32) {
    %c0_i32 = arith.constant 0 : i32
    %c0_i32_0 = arith.constant 0 : i32
    %c0_i32_1 = arith.constant 0 : i32
    return %arg1, %c0_i32, %c0_i32_0 : i32, i32, i32
  }
  func.func @transform_10(%arg0: i32, %arg1: i32) -> (i32, i32, i32) {
    %c0_i32 = arith.constant 0 : i32
    %c0_i32_0 = arith.constant 0 : i32
    %c0_i32_1 = arith.constant 0 : i32
    return %arg1, %c0_i32, %c0_i32_0 : i32, i32, i32
  }
  func.func @transform_11(%arg0: i32, %arg1: i32) -> (i32, i32, i32) {
    %c0_i32 = arith.constant 0 : i32
    %c0_i32_0 = arith.constant 0 : i32
    %c0_i32_1 = arith.constant 0 : i32
    return %arg0, %c0_i32, %c0_i32_0 : i32, i32, i32
  }
}

</mosaic_0001>

<bundles_post_ra>
// kernel: tpu_custom_call.1
= control target key start
LH: loop header
LB: loop body
LE: loop exit
PB: predicated region body
PF: predicated region fallthrough
CT: control target
= control target key end

     0   :  { %s4048_s0 = inlined_call_operand.vmem [shape: bf16[2,8,128], index: 0, kind: input, shape index: {}]   ;;  %s4049_s1 = inlined_call_operand.vmem [shape: f32[2,1,8], index: 1, kind: input, shape index: {}]   ;;  %s4050_s2 = inlined_call_operand.vmem [shape: f32[2,128], index: 2, kind: input, shape index: {}]   ;;  %s4051_s3 = inlined_call_operand.hbm [shape: bf16[2,128,384], index: 3, kind: input, shape index: {}]   ;;  %s4052_s4 = inlined_call_operand.vmem [shape: f32[2,1,384], index: 4, kind: input, shape index: {}]   ;;  %s4053_s5 = inlined_call_operand.hbm [shape: bf16[2,128,128], index: 5, kind: input, shape index: {}]   ;;  %s4054_s6 = inlined_call_operand.vmem [shape: f32[2,3,128], index: 6, kind: input, shape index: {}]   ;;  %s4055_s7 = inlined_call_operand.hbm [shape: bf16[2,128,256], index: 7, kind: input, shape index: {}]   ;;  %s4056_s8 = inlined_call_operand.vmem [shape: f32[2,1,256], index: 8, kind: input, shape index: {}]   ;;  %s4057_s9 = inlined_call_operand.hbm [shape: bf16[2,256,128], index: 9, kind: input, shape index: {}]   ;;  %s4058_s10 = inlined_call_operand.vmem [shape: f32[2,3,128], index: 10, kind: input, shape index: {}]   ;;  %s4059_s11 = inlined_call_operand.hbm [shape: bf16[2,8,128], index: 11, kind: output, shape index: {}]  }
   0x1   :  { %4066 = sst [smem:[#allocation21_spill]] %s4048_s0 }
   0x2   :  { %4067 = sst [smem:[#allocation22_spill]] %s4049_s1 }
   0x3   :  { %4068 = sst [smem:[#allocation23_spill]] %s4050_s2 }
   0x4   :  { %4069 = sst [smem:[#allocation24_spill]] %s4051_s3 }
   0x5   :  { %4070 = sst [smem:[#allocation25_spill]] %s4053_s5 }
   0x6   :  { %4071 = sst [smem:[#allocation26_spill]] %s4059_s11 }
   0x7   :  { %16 = vsyncpa [#allocation5], 0 }
   0x8   :  { %18 = vsyncpa [#allocation5 + $0x1], 0 }
   0x9   :  { %19 = vsyncpa [#allocation8], 0 }
   0xa   :  { %21 = vsyncpa [#allocation8 + $0x1], 0 }
   0xb   :  { %22 = vsyncpa [#allocation11], 0 }
   0xc   :  { %24 = vsyncpa [#allocation11 + $0x1], 0 }
   0xd   :  { %25 = vsyncpa [#allocation6], 0  ;;  %s3528_s17 = smov 0   ;;  %s3530_s18 = smov 0  }
   0xe   :  { %s3532_s19 = smov 0   ;;  %s3534_s20 = smov 0  }
   0xf   :  { %s3536_s21 = smov 0   ;;  %s3538_s22 = smov 0  }
  0x10 LB: > { %4072 = sst [smem:[#allocation17_spill]] %s3436_s19  ;;  %s3557_s23 = sadd.s32 4294967295, %s3448_s22   ;;  %s3448_s22 = sphi %s3538_s22, %s31_s22   ;;  %s3444_s21 = sphi %s3536_s21, %s4094_s21   ;;  %s3440_s20 = sphi %s3534_s20, %s4093_s20   ;;  %s3436_s19 = sphi %s3532_s19, %s4089_s19   ;;  %s3432_s18 = sphi %s3530_s18, %s4092_s18   ;;  %s3428_s17 = sphi %s3528_s17, %s4091_s17  }
  0x11   : > { %4073 = sst [smem:[#allocation18_spill]] %s3448_s22  ;;  %s40_s24 = sadd.s32 1, %s3444_s21 }
  0x12   : > { %p41_p0 = scmp.ge.s32.totalorder %s40_s24, 2  ;;  %s123_s25 = sadd.s32 1, %s3436_s19 }
  0x13   : > { %p130_p1 = scmp.ne.s32.totalorder %s3436_s19, %s3432_s18  ;;  %p131_p2 = scmp.eq.s32.totalorder %s3448_s22, 0 }
  0x14   : > { %s4096_s24 = smov (%p41_p0, %s40_s24), 0  ;;  %p136_p4 = scmp.ne.s32.totalorder %s3432_s18, %s3428_s17 }
  0x15   : > { %4074 = sst [smem:[#allocation19_spill]] %s4096_s24  ;;  %p132_p3 = por %p131_p2, %p130_p1 }
  0x16   : > { %s120_s26 = ssub.s32 %s3444_s21, %s4096_s24  ;;  %p137_p5 = scmp.eq.s32.totalorder %s3557_s23, 0 }
  0x17   : > { %p121_p6 = scmp.eq.s32.totalorder %s120_s26, 0  ;;  %p3053_p8 = scmp.lt.s32.totalorder %s3448_s22, 2 }
  0x18   : > { %p3570_p7 = por %p137_p5, %p136_p4  ;;  %s3579_s29 = sand.u32 1, %s3436_s19  }
  0x19   : > { %s3576_s28 = scalar_select %p121_p6, %s3436_s19, %s123_s25  }
  0x1a   : > { %p3581_p9 = pnand %p3053_p8, %p132_p3  ;;  %s416_s12 = sand.u32 1, %s3448_s22  }
  0x1b   : > { %4076 = sst [smem:[#allocation20_spill]] %s3576_s28  ;;  %s2688_s13 = sshll.u32 %s3579_s29, 6 }
  0x1c   : > { %s2798_s14 = sshll.u32 %s3444_s21, 10  ;;  %s4078_s5 = sld [smem:[#allocation25_spill]] }
  0x1d   : > { %s420_s26 = scalar_lea.vmem [#allocation7], %s2688_s13  ;;  %p2697_p10 = scmp.ge.s32.totalorder %s3448_s22, 1 }
  0x1e   : > { %s427_s24 = sshll.u32 %s420_s26, 4  ;;  %s3592_s25 = scalar_lea.sflag [#allocation8], %s416_s12  ;;  %s428_s24 = int_to_ptr.vmem [resolvable:$true] %s427_s24 }
  0x1f   : > { %p3252_p11 = pneg %p3581_p9  ;;  %s3263_s28 = scalar_lea.vmem %s428_s24, 1024 }
  0x20   : > { %p3264_p12 = scmp.ne.s32.totalorder %s428_s24, %s3263_s28  ;;  %s3450_s19 = smov [#allocation7]  }
  0x21   : > { %s3268_s11 = sshll.u32 %s3450_s19, 4  ;;  %s3269_s11 = int_to_ptr.vmem [resolvable:$false] %s3268_s11 }
  0x22   : > { %s426_s17 = scalar_lea.hbm %s4078_s5, %s2798_s14  ;;  %p3266_p13 = pnand %p3264_p12, %p3252_p11 }
  0x23   : > { %s3270_s1 = scalar_lea.vmem %s3269_s11, 2048  ;;  %p3271_p1 = scmp.lt.s32.totalorder %s428_s24, %s3269_s11 }
  0x24   : > { %p3267_p0 = pneg %p3266_p13  ;;  %p3272_p2 = scmp.lt.s32.totalorder %s3270_s1, %s3263_s28 }
  0x26   : > { %p3273_p3 = por %p3272_p2, %p3271_p1 }
  0x28   : > { %p3274_p4 = pnand %p3273_p3, %p3267_p0 }
  0x2a   : > { %3277 = shalt.err (!%p3274_p4)
}
  0x2b   : > { %s4063_s13 = smov 64   ;;  %s4064_s12 = smov 4  }
  0x2c   : > { %3046 = dma.hbm_to_vmem [thread:$0]  (!%p3581_p9), %s426_s17, 1024, %s428_s24, %s3592_s25, %s4063_s13, %s4063_s13, %s4064_s12  }
  0x2d   : > { %p498_p5 = scmp.lt.s32.totalorder %s3448_s22, 3  ;;  %s3024_s11 = smul.u32 192, %s3579_s29 }
  0x2e   : > { %s3025_s19 = smul.u32 3072, %s3444_s21  ;;  %s4080_s3 = sld [smem:[#allocation24_spill]] }
  0x2f   : > { %p3608_p6 = pnand %p2697_p10, %p498_p5  ;;  %s392_s16 = scalar_lea.vmem [#allocation4], %s3024_s11 }
  0x30   : > { %s399_s26 = sshll.u32 %s392_s16, 4  ;;  %s2691_s5 = sshll.u32 %s3579_s29, 7  ;;  %s400_s26 = int_to_ptr.vmem [resolvable:$true] %s399_s26 }
  0x31   : > { %s389_s2 = scalar_lea.sflag [#allocation5], %s3579_s29  ;;  %s3291_s0 = scalar_lea.vmem %s400_s26, 3072 }
  0x32   : > { %p3292_p8 = scmp.ne.s32.totalorder %s400_s26, %s3291_s0  ;;  %s3453_s24 = smov [#allocation4]  }
  0x33   : > { %s3296_s17 = sshll.u32 %s3453_s24, 4  ;;  %s3297_s17 = int_to_ptr.vmem [resolvable:$false] %s3296_s17 }
  0x34   : > { %s398_s15 = scalar_lea.hbm %s4080_s3, %s3025_s19  ;;  %p3294_p12 = pnand %p3292_p8, %p3252_p11 }
  0x35   : > { %s3298_s13 = scalar_lea.vmem %s3297_s17, 6144  ;;  %p3299_p13 = scmp.lt.s32.totalorder %s400_s26, %s3297_s17 }
  0x36   : > { %p3295_p10 = pneg %p3294_p12  ;;  %p3300_p0 = scmp.lt.s32.totalorder %s3298_s13, %s3291_s0 }
  0x38   : > { %p3301_p1 = por %p3300_p0, %p3299_p13 }
  0x3a   : > { %p3302_p2 = pnand %p3301_p1, %p3295_p10 }
  0x3c   : > { %3305 = shalt.err (!%p3302_p2)
}
  0x3d   : > { %s3454_s11 = smov 192   ;;  %s3455_s19 = smov 12  }
  0x3e   : > { %3043 = dma.hbm_to_vmem [thread:$0]  (!%p3581_p9), %s398_s15, 3072, %s400_s26, %s389_s2, %s3454_s11, %s3454_s11, %s3455_s19  }
  0x3f   : > { %s2799_s28 = sshll.u32 %s3444_s21, 11  ;;  %s448_s12 = scalar_lea.vmem [#allocation9], %s2691_s5 }
  0x40   : > { %s454_s24 = scalar_lea.hbm %s4055_s7, %s2799_s28  ;;  %s455_s17 = sshll.u32 %s448_s12, 4  ;;  %s456_s17 = int_to_ptr.vmem [resolvable:$true] %s455_s17 }
  0x41   : > { %s3319_s0 = scalar_lea.vmem %s456_s17, 2048  ;;  %s3456_s13 = smov [#allocation9]  }
  0x42   : > { %p3320_p3 = scmp.ne.s32.totalorder %s456_s17, %s3319_s0  ;;  %s3324_s3 = sshll.u32 %s3456_s13, 4  ;;  %s3325_s3 = int_to_ptr.vmem [resolvable:$false] %s3324_s3 }
  0x43   : > { %s3326_s22 = scalar_lea.vmem %s3325_s3, 4096  ;;  %p3327_p8 = scmp.lt.s32.totalorder %s456_s17, %s3325_s3 }
  0x44   : > { %p3322_p4 = pnand %p3320_p3, %p3252_p11  ;;  %p3328_p12 = scmp.lt.s32.totalorder %s3326_s22, %s3319_s0 }
  0x46   : > { %p3323_p5 = pneg %p3322_p4  ;;  %p3329_p10 = por %p3328_p12, %p3327_p8 }
  0x48   : > { %p3330_p13 = pnand %p3329_p10, %p3323_p5 }
  0x4a   : > { %3333 = shalt.err (!%p3330_p13)
}
  0x4b   : > { %s3457_s2 = smov 128   ;;  %s3458_s12 = smov 8  }
  0x4c   : > { %3049 = dma.hbm_to_vmem [thread:$0]  (!%p3581_p9), %s454_s24, 2048, %s456_s17, %s3592_s25, %s3457_s2, %s3457_s2, %s3458_s12  }
  0x4d   : > { %s482_s11 = scalar_lea.hbm %s4057_s9, %s2799_s28  ;;  %s476_s19 = scalar_lea.vmem [#allocation10], %s2691_s5 }
  0x4e   : > { %s483_s3 = sshll.u32 %s476_s19, 4  ;;  %s473_s22 = scalar_lea.sflag [#allocation11], %s3579_s29  ;;  %s484_s3 = int_to_ptr.vmem [resolvable:$true] %s483_s3 }
  0x4f   : > { %s3347_s14 = scalar_lea.vmem %s484_s3, 2048  ;;  %s3459_s16 = smov [#allocation10]  }
  0x50   : > { %p3348_p0 = scmp.ne.s32.totalorder %s484_s3, %s3347_s14  ;;  %s3352_s0 = sshll.u32 %s3459_s16, 4  ;;  %s3353_s0 = int_to_ptr.vmem [resolvable:$false] %s3352_s0 }
  0x51   : > { %s3354_s13 = scalar_lea.vmem %s3353_s0, 4096  ;;  %p3355_p3 = scmp.lt.s32.totalorder %s484_s3, %s3353_s0 }
  0x52   : > { %p3350_p1 = pnand %p3348_p0, %p3252_p11  ;;  %p3356_p4 = scmp.lt.s32.totalorder %s3354_s13, %s3347_s14 }
  0x54   : > { %p3351_p2 = pneg %p3350_p1  ;;  %p3357_p5 = por %p3356_p4, %p3355_p3 }
  0x56   : > { %p3358_p8 = pnand %p3357_p5, %p3351_p2 }
  0x58   : > { %3361 = shalt.err (!%p3358_p8)
}
  0x59   : > { %s4081_s5 = smov 4   ;;  %s4082_s25 = smov 64  }
  0x5a   : > { %3052 = dma.hbm_to_vmem [thread:$0]  (!%p3581_p9), %s482_s11, 2048, %s484_s3, %s473_s22, %s4082_s25, %s4082_s25, %s4081_s5  }
  0x5b   : > { %502 = sbr.rel (%p3608_p6) target bundleno = 4382 (0x111e), region = 64  ;;  %s504_s29 = sand.u32 (!%p3608_p6), 1, %s3432_s18  }
  0x5c   : > { %s3026_s28 = smul.u32 (!%p3608_p6), 192, %s504_s29  ;;  %s505_s24 = scalar_lea.sflag (!%p3608_p6), [#allocation5], %s504_s29 }
  0x5e   : > { %s3653_s17 = scalar_lea.vmem (!%p3608_p6), [#allocation4], %s3026_s28 }
  0x60   : > { %3411 = dma.done.wait (%p3570_p7), %s505_s24, 3072  }
  0x61   : > { %3413 = vsyncadd (%p3570_p7), %s505_s24, 4294964224  ;;  %s513_s30 = sand.u32 1, %s3557_s23   ;;  %s2698_s2 = sshll.u32 %s504_s29, 6 }
  0x62   : > { %s514_s12 = scalar_lea.sflag [#allocation8], %s513_s30  ;;  %s3660_s15 = scalar_lea.vmem [#allocation7], %s2698_s2 }
  0x63   : > { %3415 = dma.done.wait (%p3570_p7), %s514_s12, 3072  }
  0x64   : > { %3417 = vsyncadd (%p3570_p7), %s514_s12, 4294964224  ;;  %s2699_s1 = sshll.u32 %s504_s29, 7  ;;  %s532_s11 = scalar_lea.sflag [#allocation11], %s504_s29 }
  0x65   : > { %s3666_s26 = scalar_lea.vmem [#allocation9], %s2699_s1  ;;  %s3668_s19 = scalar_lea.vmem [#allocation10], %s2699_s1 }
  0x66   : > { %3419 = dma.done.wait (%p3570_p7), %s532_s11, 2048  }
  0x67   : > { %3421 = vsyncadd (%p3570_p7), %s532_s11, 4294965248  ;;  %p620_p9 = scmp.lt.s32.totalorder %s3440_s20, 1  ;;  %p2704_p7 = scmp.ne.s32.totalorder %s3440_s20, 0 }
  0x68   : > { %s4083_s16 = sld [smem:[#allocation21_spill]] (!%p2704_p7) }
  0x69   : > { %s621_s3 = scalar_select %p620_p9, %s3440_s20, 1 }
  0x6a   : > { %641 = sbr.rel (%p2704_p7) target bundleno = 425 (0x1a9), region = 84  ;;  %s4084_s0 = sld [smem:[#allocation23_spill]] (!%p2704_p7) }
  0x6b   : > { %s3027_s22 = smul.u32 3, %s621_s3  ;;  %s2701_s14 = sshll.u32 %s621_s3, 2 }
  0x6c   : > { %s3679_s13 = scalar_lea.vmem %s4054_s6, %s2701_s14  ;;  %s2702_s5 = sshll.u32 %s621_s3, 1 }
  0x6d   : > { %s3684_s28 = scalar_lea.vmem %s4052_s4, %s3027_s22  ;;  %s3689_s30 = scalar_lea.vmem %s4056_s8, %s2702_s5 }
  0x6e   : > { %s3694_s1 = scalar_lea.vmem %s4058_s10, %s2701_s14 }
  0x6f   : > { %v2808_v0 = vld [vmem:[%s4083_s16] sm:$0xff]   ;;  %v670_v15 = vlaneseq }
  0x70   : > { %v2809_v1 = vunpack.c.l.bf16 %v2808_v0  ;;  %v2810_v2 = vunpack.c.h.bf16 %v2808_v0  ;;  %v646_v20 = vld [vmem:[%s4084_s0] sm:$0x3] }
  0x71   : > { %v671_v18 = vshrl.u32 %v670_v15, 7 }
  0x72   : > { %647 = vadd.xlane.f32.xlu0 %v2809_v1 }
  0x73   : > { %v672_v19 = vsub.s32 0, %v671_v18  ;;  %v678_v21 = vsub.s32 1, %v671_v18 }
  0x75   : > { %v673_v22 = vrot.slane %v646_v20, %v672_v19  ;;  %v679_v24 = vrot.slane %v646_v20, %v678_v21 }
  0x76   : > { %649 = vadd.xlane.f32.xlu0 %v2810_v2 }
  0xfb   : > { %v648_v3 = vpop.xlane.xlu0 %647 }
  0xfc   : > { %v652_v4 = vmul.f32 0.0078125, %v648_v3 }
  0xfe   : > { %v654_v5 = vsub.f32 %v2809_v1, %v652_v4 }
  0xff   : > { %v650_v6 = vpop.xlane.xlu0 %649 }
 0x100   : > { %v653_v7 = vmul.f32 0.0078125, %v650_v6  ;;  %v656_v8 = vmul.f32 %v654_v5, %v654_v5 }
 0x102   : > { %v655_v9 = vsub.f32 %v2810_v2, %v653_v7  ;;  %658 = vadd.xlane.f32.xlu1 %v656_v8 }
 0x104   : > { %v657_v10 = vmul.f32 %v655_v9, %v655_v9 }
 0x106   : > { %660 = vadd.xlane.f32.xlu1 %v657_v10 }
 0x18b   : > { %v659_v11 = vpop.xlane.xlu1 %658 }
 0x18c   : > { %v662_v12 = vmul.f32 0.0078125, %v659_v11 }
 0x18e   : > { %v664_v13 = vadd.f32 1e-12, %v662_v12 }
 0x18f   : > { %v661_v14 = vpop.xlane.xlu1 %660 }
 0x190   : > { %3118 = vrsqrt.f32 %v664_v13  ;;  %v663_v16 = vmul.f32 0.0078125, %v661_v14 }
 0x192   : > { %v665_v17 = vadd.f32 1e-12, %v663_v16 }
 0x194   : > { %3120 = vrsqrt.f32 %v665_v17 }
 0x19d   : > { %v3119_v23 = vpop.eup %3118 }
 0x19e   : > { %v668_v25 = vmul.f32 %v3119_v23, %v654_v5 }
 0x1a0   : > { %v674_v26 = vmul.f32 %v673_v22, %v668_v25 }
 0x1a1   : > { %v3121_v27 = vpop.eup %3120 }
 0x1a2   : > { %v680_v28 = vadd.f32 %v679_v24, %v674_v26  ;;  %v669_v29 = vmul.f32 %v3121_v27, %v655_v9 }
 0x1a4   : > { %682 = vst [vmem:[#allocation2] sm:$0xff] %v680_v28  ;;  %v675_v30 = vmul.f32 %v673_v22, %v669_v29 }
 0x1a6   : > { %v681_v31 = vadd.f32 %v679_v24, %v675_v30 }
 0x1a8   : > { %683 = vst [vmem:[#allocation2 + $0x8] sm:$0xff] %v681_v31 }
 0x1a9 PF: > { %v3122_v32 = vld [vmem:[%s3653_s17 + $0xac] ss:$12 sps:$4 sm:$0xff]   ;;  %v3124_v33 = vld [vmem:[%s3653_s17 + $0xa8] ss:$12 sps:$4 sm:$0xff]   ;;  %v3460_v34 = vmov 0   ;;  %v3461_v35 = vmov 0.0   ;;  %v721_v61 = vlaneseq }
 0x1aa   : > { %896 = vmatprep.mubr.bf16.mxu0 %v3460_v34  ;;  %2888 = vmatprep.subr.bf16.mxu1 %v3461_v35  ;;  %v3125_v36 = vld [vmem:[%s3653_s17 + $0x94] ss:$12 sps:$4 sm:$0xff]   ;;  %v3127_v37 = vld [vmem:[%s3653_s17 + $0x90] ss:$12 sps:$4 sm:$0xff]   ;;  %v3130_v39 = vld [vmem:[%s3653_s17 + $0x78] ss:$12 sps:$4 sm:$0xff]  }
 0x1ab   : > { %864 = vmatprep.subr.bf16.mxu0 %v3122_v32  ;;  %v3128_v38 = vld [vmem:[%s3653_s17 + $0x7c] ss:$12 sps:$4 sm:$0xff]   ;;  %v3131_v40 = vld [vmem:[%s3653_s17 + $0x64] ss:$12 sps:$4 sm:$0xff]   ;;  %v3133_v41 = vld [vmem:[%s3653_s17 + $0x60] ss:$12 sps:$4 sm:$0xff]  }
 0x1ac   : > { %865 = vmatpush1.bf16.msra.mxu0 %v3124_v33  ;;  %v3134_v42 = vld [vmem:[%s3653_s17 + $0x4c] ss:$12 sps:$4 sm:$0xff]   ;;  %v3146_v43 = vld [vmem:[%s3653_s17 + $0xb0] ss:$12 sps:$4 sm:$0xff]   ;;  %v3136_v45 = vld [vmem:[%s3653_s17 + $0x48] ss:$12 sps:$4 sm:$0xff]  }
 0x1ad   : > { %866 = vmatprep.subr.bf16.mxu0 %v3125_v36  ;;  %2889 = vmatpush3.bf16.msra.mxu1 %v3146_v43  ;;  %v3147_v44 = vld [vmem:[%s3653_s17 + $0x98] ss:$12 sps:$4 sm:$0xff]   ;;  %v3137_v46 = vld [vmem:[%s3653_s17 + $0x34] ss:$12 sps:$4 sm:$0xff]   ;;  %v3139_v48 = vld [vmem:[%s3653_s17 + $0x30] ss:$12 sps:$4 sm:$0xff]  }
 0x1ae   : > { %2890 = vmatprep.subr.bf16.mxu1 %v3461_v35  ;;  %v3148_v47 = vld [vmem:[%s3653_s17 + $0x80] ss:$12 sps:$4 sm:$0xff]   ;;  %v3140_v49 = vld [vmem:[%s3653_s17 + $0x1c] ss:$12 sps:$4 sm:$0xff]   ;;  %v3142_v51 = vld [vmem:[%s3653_s17 + $0x18] ss:$12 sps:$4 sm:$0xff]  }
 0x1af   : > { %v3149_v50 = vld [vmem:[%s3653_s17 + $0x68] ss:$12 sps:$4 sm:$0xff]   ;;  %v3143_v52 = vld [vmem:[%s3653_s17 + $0x4] ss:$12 sps:$4 sm:$0xff]   ;;  %v3145_v54 = vld [vmem:[%s3653_s17] ss:$12 sps:$4 sm:$0xff]  }
 0x1b0   : > { %867 = vmatpush1.bf16.msra.mxu0 %v3127_v37  ;;  %v3150_v53 = vld [vmem:[%s3653_s17 + $0x50] ss:$12 sps:$4 sm:$0xff]   ;;  %v3729_v55 = vld [vmem:[#allocation2] sm:$0xff]  ;;  %v3731_v56 = vld [vmem:[#allocation2 + $0x8] sm:$0xff]  ;;  %vm3462_vm0 = vmmov 0   ;;  %v722_v62 = vshrl.u32 %v721_v61, 7 }
 0x1b1   : > { %868 = vmatprep.subr.bf16.mxu0 %v3128_v38  ;;  %2891 = vmatpush3.bf16.msra.mxu1 %v3147_v44  ;;  %v3151_v57 = vld [vmem:[%s3653_s17 + $0x38] ss:$12 sps:$4 sm:$0xff]   ;;  %v686_v58 = vpack.c.bf16 %v3731_v56, %v3729_v55  ;;  %v3152_v59 = vld [vmem:[%s3653_s17 + $0x20] ss:$12 sps:$4 sm:$0xff]   ;;  %v3153_v60 = vld [vmem:[%s3653_s17 + $0x8] ss:$12 sps:$4 sm:$0xff]  }
 0x1b2   : > { %2892 = vmatprep.subr.bf16.mxu1 %v3461_v35  ;;  %2904 = vmatprep.mubr.msk.bf16.mxu1 %vm3462_vm0, %v3461_v35  ;;  %v3750_v63 = vsub.s32 1, %v722_v62  ;;  %v719_v0 = vld [vmem:[%s3684_s28] sm:$0x7]  ;;  %v3754_v3 = vsub.s32 0, %v722_v62  ;;  %vm968_vm1 = vcmask 261120   ;;  %v3779_v18 = vsub.s32 2, %v722_v62 }
 0x1b3   : > { %vm1105_vm2 = vcmask 1043456   ;;  %s4085_s25 = sld [smem:[#allocation22_spill]]  ;;  %vm1077_vm3 = vcmask 64512   ;;  %s3463_s24 = smov 96   ;;  %vm1429_vm4 = vcmask 523520   ;;  %vm1664_vm5 = vcmask 785920  }
 0x1b4   : > { %869 = vmatpush1.bf16.msra.mxu0 %v3130_v39  ;;  %v728_v1 = vrot.slane %v719_v0, %v3750_v63  ;;  %v724_v7 = vrot.slane %v719_v0, %v3754_v3  ;;  %v732_v19 = vrot.slane %v719_v0, %v3779_v18  ;;  %s3464_s27 = smov 64   ;;  %s3465_s2 = smov 32   ;;  %vm1899_vm6 = vcmask 1048320  }
 0x1b5   : > { %870 = vmatprep.subr.bf16.mxu0 %v3131_v40  ;;  %2893 = vmatpush3.bf16.msra.mxu1 %v3148_v47  ;;  %p2793_p11 = scmp.ne.s32.totalorder %s3440_s20, 1 }
 0x1b6   : > { %2894 = vmatprep.subr.bf16.mxu1 %v3461_v35 }
 0x1b8   : > { %871 = vmatpush1.bf16.msra.mxu0 %v3133_v41 }
 0x1b9   : > { %872 = vmatprep.subr.bf16.mxu0 %v3134_v42  ;;  %2895 = vmatpush3.bf16.msra.mxu1 %v3149_v50  ;;  %v3790_v29 = vld [vmem:[%s4085_s25] ss:$0 sm:$0xff]  ;;  %v3797_v39 = vld [vmem:[%s4085_s25 + $0x1] ss:$0 sm:$0xff] }
 0x1ba   : > { %2896 = vmatprep.subr.bf16.mxu1 %v3461_v35 }
 0x1bc   : > { %873 = vmatpush1.bf16.msra.mxu0 %v3136_v45 }
 0x1bd   : > { %874 = vmatprep.subr.bf16.mxu0 %v3137_v46  ;;  %2897 = vmatpush3.bf16.msra.mxu1 %v3150_v53 }
 0x1be   : > { %2898 = vmatprep.subr.bf16.mxu1 %v3461_v35 }
 0x1c0   : > { %875 = vmatpush1.bf16.msra.mxu0 %v3139_v48 }
 0x1c1   : > { %876 = vmatprep.subr.bf16.mxu0 %v3140_v49  ;;  %2899 = vmatpush3.bf16.msra.mxu1 %v3151_v57 }
 0x1c2   : > { %2900 = vmatprep.subr.bf16.mxu1 %v3461_v35 }
 0x1c4   : > { %877 = vmatpush1.bf16.msra.mxu0 %v3142_v51 }
 0x1c5   : > { %878 = vmatprep.subr.bf16.mxu0 %v3143_v52  ;;  %2901 = vmatpush3.bf16.msra.mxu1 %v3152_v59 }
 0x1c6   : > { %2902 = vmatprep.subr.bf16.mxu1 %v3461_v35 }
 0x1c8   : > { %879 = vmatpush1.bf16.msra.mxu0 %v3145_v54 }
 0x1c9   : > { %2932 = vmatprep.subr.bf16.mxu0 %v3461_v35  ;;  %2903 = vmatpush3.bf16.msra.mxu1 %v3153_v60 }
 0x1ca   : > { %2908 = vmatprep.subr.bf16.mxu1 %v3461_v35 }
 0x1cb   : > { %897 = vmatmul.mubr.bf16.vlgmr.msra.gmra.mxu0 %v686_v58 }
 0x1cc   : > { %2934 = vmatprep.mubr.msk.bf16.mxu0 %vm3462_vm0, %v3461_v35  ;;  %2905 = vmatmul.mubr.bf16.vlgmr.msra.gmra.mxu1 %v686_v58 }
 0x1cd   : > { %2910 = vmatprep.mubr.msk.bf16.mxu1 %vm3462_vm0, %v3461_v35 }
 0x28b   : > { %v898_v2 = vpop.f32.mrf.mxu0 }
 0x28c   : > { %v899_v12 = vadd.f32 %v898_v2, %v724_v7  ;;  %v941_v20 = vpop.f32.mrf.mxu1 }
 0x28d   : > { %v900_v4 = vpop.f32.mrf.mxu0  ;;  %v942_v21 = vadd.f32 %v941_v20, %v732_v19 }
 0x28e   : > { %v901_v5 = vadd.f32 %v900_v4, %v728_v1  ;;  %v3764_v14 = vpack.c.bf16 %v899_v12, %v899_v12  ;;  %v2906_v22 = vpop.f32.mrf.mxu1 }
 0x28f   : > { %v902_v6 = vpop.f32.mrf.mxu0  ;;  %v3782_v23 = vpack.c.bf16 %v942_v21, %v942_v21 }
 0x290   : > { %v3757_v8 = vpack.c.bf16 %v901_v5, %v901_v5  ;;  %v903_v16 = vadd.f32 %v902_v6, %v724_v7  ;;  %v944_v24 = vpop.f32.mrf.mxu1 }
 0x291   : > { %v904_v9 = vpop.f32.mrf.mxu0  ;;  %v945_v25 = vadd.f32 %v944_v24, %v732_v19  ;;  %v1107_v26 = vsel %vm1105_vm2, %v3782_v23, 0 }
 0x292   : > { %v905_v10 = vadd.f32 %v904_v9, %v728_v1  ;;  %v973_v11 = vsel %vm968_vm1, %v3757_v8, 0  ;;  %v3773_v17 = vpack.c.bf16 %v903_v16, %v903_v16  ;;  %v2907_v27 = vpop.f32.mrf.mxu1 }
 0x293   : > { %2909 = vmatpush3.bf16.xpose.msra.mxu1 %v973_v11  ;;  %v3813_v62 = vpack.c.bf16 %v945_v25, %v945_v25 }
 0x294   : > { %2914 = vmatprep.subr.bf16.mxu1 %v3461_v35  ;;  %v3762_v13 = vpack.c.bf16 %v905_v10, %v905_v10 }
 0x295   : > { %v1153_v2 = vsel %vm1105_vm2, %v3813_v62, 0 }
 0x296   : > { %v1019_v15 = vsel %vm968_vm1, %v3762_v13, 0 }
 0x29a   : > { %2911 = vmatmul.mubr.msk.bf16.vlgmr.msra.gmra.mxu1 %vm968_vm1, %v3764_v14 }
 0x29b   : > { %2915 = vmatpush3.bf16.xpose.msra.mxu1 %v1019_v15  ;;  %2916 = vmatprep.mubr.msk.bf16.mxu1 %vm3462_vm0, %v3461_v35 }
 0x29c   : > { %2920 = vmatprep.subr.bf16.mxu1 %v3461_v35 }
 0x2a2   : > { %2917 = vmatmul.mubr.msk.bf16.vlgmr.msra.gmra.mxu1 %vm968_vm1, %v3773_v17 }
 0x2a3   : > { %2922 = vmatprep.mubr.msk.bf16.mxu1 %vm3462_vm0, %v3461_v35  ;;  %2921 = vmatpush3.bf16.msra.mxu1 %v1107_v26 }
 0x2a4   : > { %2926 = vmatprep.subr.bf16.mxu1 %v3461_v35 }
 0x35a   : > { %v1009_v28 = vpop.f32.mrf.mxu1 }
 0x35b   : > { %v1061_v30 = vmul.f32 0.17677669, %v1009_v28 }
 0x35c   : > { %v2912_v31 = vpop.f32.mrf.mxu1 }
 0x35d   : > { %v1075_v32 = vadd.f32 %v3790_v29, %v1061_v30 }
 0x35e   : > { %v1012_v33 = vpop.f32.mrf.mxu1 }
 0x35f   : > { %v1078_v36 = vsel %vm1077_vm3, %v1075_v32, -inf }
 0x360   : > { %1079 = vmax.xlane.f32.xlu0 %v1078_v36  ;;  %v2913_v37 = vpop.f32.mrf.mxu1 }
 0x362   : > { %v1055_v38 = vpop.f32.mrf.mxu1 }
 0x363   : > { %v1062_v40 = vmul.f32 0.17677669, %v1055_v38 }
 0x364   : > { %v2918_v41 = vpop.f32.mrf.mxu1 }
 0x365   : > { %v1076_v42 = vadd.f32 %v3797_v39, %v1062_v40 }
 0x366   : > { %v1058_v43 = vpop.f32.mrf.mxu1 }
 0x367   : > { %v1081_v44 = vsel %vm1077_vm3, %v1076_v42, -inf }
 0x368   : > { %1082 = vmax.xlane.f32.xlu0 %v1081_v44  ;;  %v2919_v45 = vpop.f32.mrf.mxu1 }
 0x37e   : > { %1199 = vrot.lane.b32.xlu0 %v3757_v8, %s3463_s24 }
 0x3e9   : > { %v1080_v46 = vpop.xlane.xlu0 %1079 }
 0x3ea   : > { %v1084_v47 = vsub.f32 %v1075_v32, %v1080_v46 }
 0x3ec   : > { %v1086_v48 = vmul.f32 1.442695, %v1084_v47 }
 0x3ee   : > { %3202 = vpow2.f32 %v1086_v48 }
 0x3f1   : > { %v1083_v49 = vpop.xlane.xlu0 %1082 }
 0x3f2   : > { %v1085_v54 = vsub.f32 %v1076_v42, %v1083_v49 }
 0x3f4   : > { %v1088_v57 = vmul.f32 1.442695, %v1085_v54 }
 0x3f5   : > { %v1200_v50 = vpop.permute.xlu0 %1199 }
 0x3f6   : > { %v1205_v51 = vsel %vm968_vm1, %v1200_v50, 0  ;;  %3204 = vpow2.f32 %v1088_v57 }
 0x3f7   : > { %2933 = vmatpush3.bf16.xpose.msra.mxu0 %v1205_v51 }
 0x3f8   : > { %2944 = vmatprep.subr.bf16.mxu0 %v3461_v35 }
 0x3fb   : > { %v3203_v52 = vpop.eup %3202 }
 0x3fc   : > { %v1090_v53 = vsel %vm1077_vm3, %v3203_v52, 0.0 }
 0x3fd   : > { %1091 = vadd.xlane.f32.xlu1 %v1090_v53 }
 0x403   : > { %v3205_v58 = vpop.eup %3204 }
 0x404   : > { %v1093_v59 = vsel %vm1077_vm3, %v3205_v58, 0.0 }
 0x40e   : > { %1249 = vrot.lane.b32.xlu1 %v3762_v13, %s3463_s24 }
 0x432   : > { %1094 = vadd.xlane.f32.xlu1 %v1093_v59 }
 0x443   : > { %1197 = vrot.lane.b32.xlu1 %v3764_v14, %s3463_s24 }
 0x447   : > { %1247 = vrot.lane.b32.xlu1 %v3773_v17, %s3463_s24 }
 0x486   : > { %v1092_v60 = vpop.xlane.xlu1 %1091 }
 0x487   : > { %3206 = vrcp.f32 %v1092_v60 }
 0x48a   : > { %v1250_v4 = vpop.permute.xlu1 %1249 }
 0x48b   : > { %v1255_v11 = vsel %vm968_vm1, %v1250_v4, 0 }
 0x494   : > { %v3207_v61 = vpop.eup %3206 }
 0x495   : > { %v1098_v0 = vmul.f32 %v3207_v61, %v3203_v52 }
 0x497   : > { %v1100_v1 = vpack.c.bf16 %v1098_v0, %v1098_v0 }
 0x499   : > { %2923 = vmatmul.mubr.msk.bf16.vlgmr.msra.gmra.mxu1 %vm1077_vm3, %v1100_v1 }
 0x49a   : > { %2927 = vmatpush3.bf16.msra.mxu1 %v1153_v2  ;;  %2928 = vmatprep.mubr.msk.bf16.mxu1 %vm3462_vm0, %v3461_v35 }
 0x49b   : > { %2938 = vmatprep.subr.bf16.mxu1 %v3461_v35 }
 0x4bb   : > { %v1095_v5 = vpop.xlane.xlu1 %1094 }
 0x4bc   : > { %3208 = vrcp.f32 %v1095_v5 }
 0x4bf   : > { %v1198_v6 = vpop.permute.xlu1 %1197 }
 0x4c0   : > { %2935 = vmatmul.mubr.msk.bf16.vlgmr.msra.gmra.mxu0 %vm968_vm1, %v1198_v6 }
 0x4c1   : > { %2946 = vmatprep.mubr.msk.bf16.mxu0 %vm3462_vm0, %v3461_v35 }
 0x4c3   : > { %v1248_v12 = vpop.permute.xlu1 %1247 }
 0x4c9   : > { %v3209_v7 = vpop.eup %3208 }
 0x4ca   : > { %v1099_v9 = vmul.f32 %v3209_v7, %v3205_v58 }
 0x4cc   : > { %v1101_v10 = vpack.c.bf16 %v1099_v9, %v1099_v9 }
 0x4ce   : > { %2929 = vmatmul.mubr.msk.bf16.vlgmr.msra.gmra.mxu1 %vm1077_vm3, %v1101_v10 }
 0x4cf   : > { %2939 = vmatpush3.bf16.xpose.msra.mxu1 %v1255_v11  ;;  %2940 = vmatprep.mubr.msk.bf16.mxu1 %vm3462_vm0, %v3461_v35 }
 0x4d0   : > { %2950 = vmatprep.subr.bf16.mxu1 %v3461_v35 }
 0x4d6   : > { %2941 = vmatmul.mubr.msk.bf16.vlgmr.msra.gmra.mxu1 %vm968_vm1, %v1248_v12 }
 0x4d7   : > { %2952 = vmatprep.mubr.msk.bf16.mxu1 %vm3462_vm0, %v3461_v35 }
 0x559   : > { %v1143_v15 = vpop.f32.mrf.mxu1 }
 0x55a   : > { %1195 = vst.msk [vmem:[#allocation3] sm:$0xff] %vm968_vm1, %v1143_v15 }
 0x55b   : > { %v2924_v16 = vpop.f32.mrf.mxu1 }
 0x55d   : > { %v1146_v19 = vpop.f32.mrf.mxu1 }
 0x55f   : > { %v2925_v20 = vpop.f32.mrf.mxu1 }
 0x580   : > { %v1241_v21 = vpop.f32.mrf.mxu0 }
 0x581   : > { %v1297_v22 = vmul.f32 0.17677669, %v1241_v21 }
 0x582   : > { %v2936_v24 = vpop.f32.mrf.mxu0 }
 0x583   : > { %v1299_v25 = vadd.f32 %v3790_v29, %v1297_v22 }
 0x584   : > { %v1244_v26 = vpop.f32.mrf.mxu0 }
 0x585   : > { %v1301_v27 = vsel %vm1077_vm3, %v1299_v25, -inf }
 0x586   : > { %1302 = vmax.xlane.f32.xlu0 %v1301_v27  ;;  %v2937_v28 = vpop.f32.mrf.mxu0 }
 0x58e   : > { %v1189_v30 = vpop.f32.mrf.mxu1 }
 0x58f   : > { %1196 = vst.msk [vmem:[#allocation3 + $0x8] sm:$0xff] %vm968_vm1, %v1189_v30 }
 0x590   : > { %v2930_v31 = vpop.f32.mrf.mxu1 }
 0x592   : > { %v1192_v32 = vpop.f32.mrf.mxu1 }
 0x594   : > { %v2931_v33 = vpop.f32.mrf.mxu1 }
 0x596   : > { %v1291_v36 = vpop.f32.mrf.mxu1 }
 0x597   : > { %v1298_v37 = vmul.f32 0.17677669, %v1291_v36 }
 0x598   : > { %v2942_v38 = vpop.f32.mrf.mxu1 }
 0x599   : > { %v1300_v40 = vadd.f32 %v3797_v39, %v1298_v37 }
 0x59a   : > { %v1294_v41 = vpop.f32.mrf.mxu1 }
 0x59b   : > { %v1304_v42 = vsel %vm1077_vm3, %v1300_v40, -inf }
 0x59c   : > { %1305 = vmax.xlane.f32.xlu1 %v1304_v42  ;;  %v2943_v43 = vpop.f32.mrf.mxu1 }
 0x5ad   : > { %1373 = vrot.lane.b32.xlu1 %v3813_v62, %s3463_s24 }
 0x5b1   : > { %1434 = vrot.lane.b32.xlu1 %v3757_v8, %s3464_s27 }
 0x5b5   : > { %1484 = vrot.lane.b32.xlu1 %v3762_v13, %s3464_s27 }
 0x5b9   : > { %1482 = vrot.lane.b32.xlu1 %v3773_v17, %s3464_s27 }
 0x60f   : > { %v1303_v44 = vpop.xlane.xlu0 %1302 }
 0x610   : > { %v1307_v45 = vsub.f32 %v1299_v25, %v1303_v44 }
 0x612   : > { %v1309_v46 = vmul.f32 1.442695, %v1307_v45 }
 0x614   : > { %3210 = vpow2.f32 %v1309_v46 }
 0x621   : > { %v3211_v47 = vpop.eup %3210 }
 0x622   : > { %v1313_v48 = vsel %vm1077_vm3, %v3211_v47, 0.0 }
 0x623   : > { %1314 = vadd.xlane.f32.xlu0 %v1313_v48 }
 0x625   : > { %v1306_v49 = vpop.xlane.xlu1 %1305 }
 0x626   : > { %v1308_v50 = vsub.f32 %v1300_v40, %v1306_v49 }
 0x628   : > { %v1311_v51 = vmul.f32 1.442695, %v1308_v50 }
 0x629   : > { %v1374_v52 = vpop.permute.xlu1 %1373 }
 0x62a   : > { %3212 = vpow2.f32 %v1311_v51  ;;  %v1379_v53 = vsel %vm1105_vm2, %v1374_v52, 0 }
 0x62b   : > { %2951 = vmatpush3.bf16.msra.mxu1 %v1379_v53 }
 0x62c   : > { %2962 = vmatprep.subr.bf16.mxu1 %v3461_v35 }
 0x62d   : > { %v1435_v2 = vpop.permute.xlu1 %1434 }
 0x62e   : > { %v1440_v5 = vsel %vm968_vm1, %v1435_v2, 0 }
 0x631   : > { %v1485_v9 = vpop.permute.xlu1 %1484 }
 0x632   : > { %v1490_v12 = vsel %vm968_vm1, %v1485_v9, 0 }
 0x635   : > { %v1483_v15 = vpop.permute.xlu1 %1482 }
 0x637   : > { %v3213_v54 = vpop.eup %3212 }
 0x638   : > { %v1316_v57 = vsel %vm1077_vm3, %v3213_v54, 0.0 }
 0x639   : > { %1317 = vadd.xlane.f32.xlu0 %v1316_v57 }
 0x64f   : > { %1325 = vrot.lane.b32.xlu0 %v3782_v23, %s3463_s24 }
 0x653   : > { %1432 = vrot.lane.b32.xlu0 %v3764_v14, %s3464_s27 }
 0x6ac   : > { %v1315_v58 = vpop.xlane.xlu0 %1314 }
 0x6ad   : > { %3214 = vrcp.f32 %v1315_v58 }
 0x6ba   : > { %v3215_v59 = vpop.eup %3214 }
 0x6bb   : > { %v1321_v61 = vmul.f32 %v3215_v59, %v3211_v47 }
 0x6bd   : > { %v1323_v4 = vpack.c.bf16 %v1321_v61, %v1321_v61 }
 0x6c2   : > { %v1318_v60 = vpop.xlane.xlu0 %1317 }
 0x6c3   : > { %3216 = vrcp.f32 %v1318_v60 }
 0x6c6   : > { %v1326_v0 = vpop.permute.xlu0 %1325 }
 0x6c7   : > { %v1331_v1 = vsel %vm1105_vm2, %v1326_v0, 0 }
 0x6c8   : > { %2945 = vmatpush3.bf16.msra.mxu0 %v1331_v1 }
 0x6c9   : > { %2956 = vmatprep.subr.bf16.mxu0 %v3461_v35 }
 0x6ca   : > { %v1433_v10 = vpop.permute.xlu0 %1432 }
 0x6cb   : > { %2947 = vmatmul.mubr.msk.bf16.vlgmr.msra.gmra.mxu0 %vm1077_vm3, %v1323_v4 }
 0x6cc   : > { %2957 = vmatpush3.bf16.xpose.msra.mxu0 %v1440_v5  ;;  %2958 = vmatprep.mubr.msk.bf16.mxu0 %vm3462_vm0, %v3461_v35 }
 0x6cd   : > { %2968 = vmatprep.subr.bf16.mxu0 %v3461_v35 }
 0x6d0   : > { %v3217_v6 = vpop.eup %3216 }
 0x6d1   : > { %v1322_v7 = vmul.f32 %v3217_v6, %v3213_v54 }
 0x6d3   : > { %2959 = vmatmul.mubr.msk.bf16.vlgmr.msra.gmra.mxu0 %vm968_vm1, %v1433_v10  ;;  %v1324_v11 = vpack.c.bf16 %v1322_v7, %v1322_v7 }
 0x6d4   : > { %2970 = vmatprep.mubr.msk.bf16.mxu0 %vm3462_vm0, %v3461_v35 }
 0x6d5   : > { %2953 = vmatmul.mubr.msk.bf16.vlgmr.msra.gmra.mxu1 %vm1077_vm3, %v1324_v11 }
 0x6d6   : > { %2963 = vmatpush3.bf16.xpose.msra.mxu1 %v1490_v12  ;;  %2964 = vmatprep.mubr.msk.bf16.mxu1 %vm3462_vm0, %v3461_v35 }
 0x6d7   : > { %2974 = vmatprep.subr.bf16.mxu1 %v3461_v35 }
 0x6dd   : > { %2965 = vmatmul.mubr.msk.bf16.vlgmr.msra.gmra.mxu1 %vm968_vm1, %v1483_v15 }
 0x6de   : > { %2976 = vmatprep.mubr.msk.bf16.mxu1 %vm3462_vm0, %v3461_v35 }
 0x78b   : > { %v3872_v16 = vpop.f32.mrf.mxu0 }
 0x78d   : > { %v2948_v19 = vpop.f32.mrf.mxu0 }
 0x78f   : > { %v1370_v20 = vpop.f32.mrf.mxu0 }
 0x791   : > { %v2949_v21 = vpop.f32.mrf.mxu0 }
 0x793   : > { %v1476_v22 = vpop.f32.mrf.mxu0 }
 0x794   : > { %v1532_v24 = vmul.f32 0.17677669, %v1476_v22 }
 0x795   : > { %v3874_v25 = vpop.f32.mrf.mxu1  ;;  %v2960_v26 = vpop.f32.mrf.mxu0 }
 0x796   : > { %v1534_v27 = vadd.f32 %v3790_v29, %v1532_v24 }
 0x797   : > { %v2954_v28 = vpop.f32.mrf.mxu1  ;;  %v1479_v30 = vpop.f32.mrf.mxu0 }
 0x798   : > { %v1536_v31 = vsel %vm1077_vm3, %v1534_v27, -inf }
 0x799   : > { %1537 = vmax.xlane.f32.xlu0 %v1536_v31  ;;  %v1418_v32 = vpop.f32.mrf.mxu1  ;;  %v2961_v33 = vpop.f32.mrf.mxu0 }
 0x79b   : > { %v2955_v36 = vpop.f32.mrf.mxu1 }
 0x79d   : > { %v1526_v37 = vpop.f32.mrf.mxu1 }
 0x79e   : > { %v1533_v38 = vmul.f32 0.17677669, %v1526_v37 }
 0x79f   : > { %v2966_v40 = vpop.f32.mrf.mxu1 }
 0x7a0   : > { %v1535_v41 = vadd.f32 %v3797_v39, %v1533_v38 }
 0x7a1   : > { %v1529_v42 = vpop.f32.mrf.mxu1 }
 0x7a2   : > { %v1539_v43 = vsel %vm1077_vm3, %v1535_v41, -inf }
 0x7a3   : > { %1540 = vmax.xlane.f32.xlu1 %v1539_v43  ;;  %v2967_v44 = vpop.f32.mrf.mxu1 }
 0x7b4   : > { %1608 = vrot.lane.b32.xlu1 %v3813_v62, %s3464_s27 }
 0x7b8   : > { %1669 = vrot.lane.b32.xlu1 %v3757_v8, %s3465_s2 }
 0x7bc   : > { %1719 = vrot.lane.b32.xlu1 %v3762_v13, %s3465_s2 }
 0x7c0   : > { %1717 = vrot.lane.b32.xlu1 %v3773_v17, %s3465_s2 }
 0x822   : > { %v1538_v45 = vpop.xlane.xlu0 %1537 }
 0x823   : > { %v1542_v46 = vsub.f32 %v1534_v27, %v1538_v45 }
 0x825   : > { %v1544_v47 = vmul.f32 1.442695, %v1542_v46 }
 0x827   : > { %3218 = vpow2.f32 %v1544_v47 }
 0x82c   : > { %v1541_v48 = vpop.xlane.xlu1 %1540 }
 0x82d   : > { %v1543_v49 = vsub.f32 %v1535_v41, %v1541_v48 }
 0x82f   : > { %v1546_v50 = vmul.f32 1.442695, %v1543_v49 }
 0x830   : > { %v1609_v51 = vpop.permute.xlu1 %1608 }
 0x831   : > { %3220 = vpow2.f32 %v1546_v50  ;;  %v1614_v52 = vsel %vm1105_vm2, %v1609_v51, 0 }
 0x832   : > { %2975 = vmatpush3.bf16.msra.mxu1 %v1614_v52 }
 0x833   : > { %2986 = vmatprep.subr.bf16.mxu1 %v3461_v35 }
 0x834   : > { %v3219_v8 = vpop.eup %3218  ;;  %v1670_v0 = vpop.permute.xlu1 %1669 }
 0x835   : > { %v1548_v13 = vsel %vm1077_vm3, %v3219_v8, 0.0  ;;  %v1675_v2 = vsel %vm968_vm1, %v1670_v0, 0 }
 0x836   : > { %1549 = vadd.xlane.f32.xlu0 %v1548_v13 }
 0x838   : > { %v1720_v5 = vpop.permute.xlu1 %1719 }
 0x839   : > { %v1725_v9 = vsel %vm968_vm1, %v1720_v5, 0  ;;  %v3158_v5 = vld [vmem:[%s3660_s15 + $0x18] sm:$0xff]  }
 0x83c   : > { %v1718_v10 = vpop.permute.xlu1 %1717 }
 0x83e   : > { %v3221_v53 = vpop.eup %3220 }
 0x83f   : > { %v1551_v17 = vsel %vm1077_vm3, %v3221_v53, 0.0 }
 0x840   : > { %1552 = vadd.xlane.f32.xlu0 %v1551_v17 }
 0x856   : > { %1560 = vrot.lane.b32.xlu0 %v3782_v23, %s3464_s27 }
 0x85a   : > { %1667 = vrot.lane.b32.xlu0 %v3764_v14, %s3465_s2 }
 0x8bf   : > { %v1550_v54 = vpop.xlane.xlu0 %1549 }
 0x8c0   : > { %3222 = vrcp.f32 %v1550_v54 }
 0x8c9   : > { %v1553_v57 = vpop.xlane.xlu0 %1552 }
 0x8ca   : > { %3224 = vrcp.f32 %v1553_v57 }
 0x8cd   : > { %v3223_v58 = vpop.eup %3222  ;;  %v1561_v59 = vpop.permute.xlu0 %1560 }
 0x8ce   : > { %v1566_v60 = vsel %vm1105_vm2, %v1561_v59, 0  ;;  %v1556_v61 = vmul.f32 %v3223_v58, %v3219_v8 }
 0x8cf   : > { %2969 = vmatpush3.bf16.msra.mxu0 %v1566_v60 }
 0x8d0   : > { %v1558_v1 = vpack.c.bf16 %v1556_v61, %v1556_v61  ;;  %2980 = vmatprep.subr.bf16.mxu0 %v3461_v35 }
 0x8d1   : > { %v1668_v6 = vpop.permute.xlu0 %1667 }
 0x8d2   : > { %2971 = vmatmul.mubr.msk.bf16.vlgmr.msra.gmra.mxu0 %vm1077_vm3, %v1558_v1  ;;  %v3154_v1 = vld [vmem:[%s3660_s15 + $0x38] sm:$0xff]  }
 0x8d3   : > { %2981 = vmatpush3.bf16.xpose.msra.mxu0 %v1675_v2  ;;  %2982 = vmatprep.mubr.msk.bf16.mxu0 %vm3462_vm0, %v3461_v35  ;;  %v3155_v2 = vld [vmem:[%s3660_s15 + $0x30] sm:$0xff]  }
 0x8d4   : > { %2992 = vmatprep.subr.bf16.mxu0 %v3461_v35 }
 0x8d7   : > { %v3225_v14 = vpop.eup %3224 }
 0x8d8   : > { %v1557_v4 = vmul.f32 %v3225_v14, %v3221_v53  ;;  %v3156_v14 = vld [vmem:[%s3660_s15 + $0x28] sm:$0xff]  }
 0x8da   : > { %2983 = vmatmul.mubr.msk.bf16.vlgmr.msra.gmra.mxu0 %vm968_vm1, %v1668_v6  ;;  %v1559_v7 = vpack.c.bf16 %v1557_v4, %v1557_v4  ;;  %v3157_v4 = vld [vmem:[%s3660_s15 + $0x20] sm:$0xff]   ;;  %v3160_v6 = vld [vmem:[%s3660_s15 + $0x8] sm:$0xff]  }
 0x8db   : > { %2994 = vmatprep.mubr.msk.bf16.mxu0 %vm3462_vm0, %v3461_v35 }
 0x8dc   : > { %2977 = vmatmul.mubr.msk.bf16.vlgmr.msra.gmra.mxu1 %vm1077_vm3, %v1559_v7 }
 0x8dd   : > { %2987 = vmatpush3.bf16.xpose.msra.mxu1 %v1725_v9  ;;  %2988 = vmatprep.mubr.msk.bf16.mxu1 %vm3462_vm0, %v3461_v35 }
 0x8de   : > { %2998 = vmatprep.subr.bf16.mxu1 %v3461_v35 }
 0x8e4   : > { %2989 = vmatmul.mubr.msk.bf16.vlgmr.msra.gmra.mxu1 %vm968_vm1, %v1718_v10  ;;  %v3161_v10 = vld [vmem:[%s3660_s15] sm:$0xff]  }
 0x8e5   : > { %3000 = vmatprep.mubr.msk.bf16.mxu1 %vm3462_vm0, %v3461_v35 }
 0x992   : > { %v1602_v11 = vpop.f32.mrf.mxu0 }
 0x994   : > { %v2972_v12 = vpop.f32.mrf.mxu0 }
 0x996   : > { %v1605_v15 = vpop.f32.mrf.mxu0 }
 0x998   : > { %v2973_v19 = vpop.f32.mrf.mxu0 }
 0x99a   : > { %v1711_v20 = vpop.f32.mrf.mxu0 }
 0x99b   : > { %v1767_v21 = vmul.f32 0.17677669, %v1711_v20 }
 0x99c   : > { %v1650_v22 = vpop.f32.mrf.mxu1  ;;  %v2984_v24 = vpop.f32.mrf.mxu0 }
 0x99d   : > { %v1769_v26 = vadd.f32 %v3790_v29, %v1767_v21 }
 0x99e   : > { %v2978_v27 = vpop.f32.mrf.mxu1  ;;  %v1714_v28 = vpop.f32.mrf.mxu0 }
 0x99f   : > { %v1771_v30 = vsel %vm1077_vm3, %v1769_v26, -inf  ;;  %v3958_v28 = vld [vmem:[%s3679_s13] sm:$0x7] }
 0x9a0   : > { %1772 = vmax.xlane.f32.xlu0 %v1771_v30  ;;  %v1653_v31 = vpop.f32.mrf.mxu1  ;;  %v2985_v32 = vpop.f32.mrf.mxu0  ;;  %v1925_v30 = vrot.slane %v3958_v28, %v3754_v3 }
 0x9a2   : > { %v2979_v33 = vpop.f32.mrf.mxu1 }
 0x9a4   : > { %v1761_v36 = vpop.f32.mrf.mxu1 }
 0x9a5   : > { %v1768_v37 = vmul.f32 0.17677669, %v1761_v36 }
 0x9a6   : > { %v2990_v38 = vpop.f32.mrf.mxu1 }
 0x9a7   : > { %v1770_v40 = vadd.f32 %v3797_v39, %v1768_v37 }
 0x9a8   : > { %v1764_v41 = vpop.f32.mrf.mxu1 }
 0x9a9   : > { %v1774_v42 = vsel %vm1077_vm3, %v1770_v40, -inf }
 0x9aa   : > { %1775 = vmax.xlane.f32.xlu1 %v1774_v42  ;;  %v2991_v43 = vpop.f32.mrf.mxu1  ;;  %v3162_v42 = vld [vmem:[%s3666_s26 + $0x70] ss:$8 sps:$4 sm:$0xff]  }
 0x9ab   : > { %v3164_v43 = vld [vmem:[%s3666_s26 + $0x74] ss:$8 sps:$4 sm:$0xff]  }
 0x9bb   : > { %1843 = vrot.lane.b32.xlu1 %v3813_v62, %s3465_s2 }
 0x9bf   : > { %1423 = vrot.lane.b32.xlu1 %v3872_v16, %s3465_s2 }
 0x9c3   : > { %1425 = vrot.lane.b32.xlu1 %v3874_v25, %s3465_s2 }
 0x9c7   : > { %1660 = vrot.lane.b32.xlu1 %v1650_v22, %s3464_s27 }
 0xa29   : > { %v1773_v29 = vpop.xlane.xlu0 %1772 }
 0xa2a   : > { %v1777_v44 = vsub.f32 %v1769_v26, %v1773_v29 }
 0xa2c   : > { %v1779_v45 = vmul.f32 1.442695, %v1777_v44 }
 0xa2e   : > { %3226 = vpow2.f32 %v1779_v45 }
 0xa33   : > { %v1776_v39 = vpop.xlane.xlu1 %1775 }
 0xa34   : > { %v1778_v46 = vsub.f32 %v1770_v40, %v1776_v39 }
 0xa36   : > { %v1781_v47 = vmul.f32 1.442695, %v1778_v46 }
 0xa37   : > { %v1844_v48 = vpop.permute.xlu1 %1843 }
 0xa38   : > { %3228 = vpow2.f32 %v1781_v47  ;;  %v1849_v49 = vsel %vm1105_vm2, %v1844_v48, 0  ;;  %v3167_v48 = vld [vmem:[%s3666_s26 + $0x64] ss:$8 sps:$4 sm:$0xff]  }
 0xa39   : > { %2999 = vmatpush3.bf16.msra.mxu1 %v1849_v49  ;;  %v3165_v49 = vld [vmem:[%s3666_s26 + $0x60] ss:$8 sps:$4 sm:$0xff]  }
 0xa3a   : > { %2165 = vmatprep.subr.bf16.mxu1 %v3164_v43 }
 0xa3b   : > { %v3227_v62 = vpop.eup %3226  ;;  %v1424_v16 = vpop.permute.xlu1 %1423 }
 0xa3c   : > { %1430 = vst.msk [vmem:[#allocation3] sm:$0xff] %vm1429_vm4, %v1424_v16  ;;  %v1783_v25 = vsel %vm1077_vm3, %v3227_v62, 0.0  ;;  %v3168_v16 = vld [vmem:[%s3666_s26 + $0x50] ss:$8 sps:$4 sm:$0xff]  }
 0xa3d   : > { %1784 = vadd.xlane.f32.xlu0 %v1783_v25  ;;  %v3171_v25 = vld [vmem:[%s3666_s26 + $0x40] ss:$8 sps:$4 sm:$0xff]  }
 0xa3f   : > { %v1426_v50 = vpop.permute.xlu1 %1425 }
 0xa40   : > { %1431 = vst.msk [vmem:[#allocation3 + $0x8] sm:$0xff] %vm1429_vm4, %v1426_v50  ;;  %v3173_v50 = vld [vmem:[%s3666_s26 + $0x44] ss:$8 sps:$4 sm:$0xff]  }
 0xa43   : > { %v1661_v51 = vpop.permute.xlu1 %1660 }
 0xa44   : > { %1666 = vst.msk [vmem:[#allocation3 + $0x8] sm:$0xff] %vm1664_vm5, %v1661_v51  ;;  %v3176_v51 = vld [vmem:[%s3666_s26 + $0x34] ss:$8 sps:$4 sm:$0xff]  }
 0xa45   : > { %v3229_v52 = vpop.eup %3228 }
 0xa46   : > { %v1786_v8 = vsel %vm1077_vm3, %v3229_v52, 0.0 }
 0xa47   : > { %1787 = vadd.xlane.f32.xlu0 %v1786_v8  ;;  %v3179_v8 = vld [vmem:[%s3666_s26 + $0x24] ss:$8 sps:$4 sm:$0xff]  }
 0xa5d   : > { %1795 = vrot.lane.b32.xlu0 %v3782_v23, %s3465_s2 }
 0xa61   : > { %1658 = vrot.lane.b32.xlu0 %v1602_v11, %s3464_s27 }
 0xac6   : > { %v1785_v13 = vpop.xlane.xlu0 %1784 }
 0xac7   : > { %3230 = vrcp.f32 %v1785_v13  ;;  %v3177_v13 = vld [vmem:[%s3666_s26 + $0x20] ss:$8 sps:$4 sm:$0xff]  }
 0xad0   : > { %v1788_v53 = vpop.xlane.xlu0 %1787 }
 0xad1   : > { %3232 = vrcp.f32 %v1788_v53  ;;  %v3182_v53 = vld [vmem:[%s3666_s26 + $0x14] ss:$8 sps:$4 sm:$0xff]  }
 0xad4   : > { %v3231_v17 = vpop.eup %3230  ;;  %v1796_v54 = vpop.permute.xlu0 %1795 }
 0xad5   : > { %v1801_v57 = vsel %vm1105_vm2, %v1796_v54, 0  ;;  %v1791_v58 = vmul.f32 %v3231_v17, %v3227_v62  ;;  %v3170_v62 = vld [vmem:[%s3666_s26 + $0x54] ss:$8 sps:$4 sm:$0xff]   ;;  %v3180_v17 = vld [vmem:[%s3666_s26 + $0x10] ss:$8 sps:$4 sm:$0xff]  }
 0xad6   : > { %2993 = vmatpush3.bf16.msra.mxu0 %v1801_v57  ;;  %v3185_v54 = vld [vmem:[%s3666_s26 + $0x4] ss:$8 sps:$4 sm:$0xff]   ;;  %v3183_v57 = vld [vmem:[%s3666_s26] ss:$8 sps:$4 sm:$0xff]  }
 0xad7   : > { %v1793_v59 = vpack.c.bf16 %v1791_v58, %v1791_v58  ;;  %3004 = vmatprep.subr.bf16.mxu0 %v3461_v35 }
 0xad8   : > { %v1659_v60 = vpop.permute.xlu0 %1658 }
 0xad9   : > { %1665 = vst.msk [vmem:[#allocation3] sm:$0xff] %vm1664_vm5, %v1659_v60  ;;  %2995 = vmatmul.mubr.msk.bf16.vlgmr.msra.gmra.mxu0 %vm1077_vm3, %v1793_v59 }
 0xada   : > { %3020 = vmatprep.mubr.msk.bf16.mxu0 %vm3462_vm0, %v3461_v35  ;;  %3005 = vmatpush3.bf16.msra.mxu0 %v3154_v1 }
 0xadb   : > { %3006 = vmatprep.subr.bf16.mxu0 %v3461_v35 }
 0xade   : > { %v3233_v23 = vpop.eup %3232  ;;  %3007 = vmatpush3.bf16.msra.mxu0 %v3155_v2  ;;  %v2045_v2 = vrot.slane %v3958_v28, %v3750_v63 }
 0xadf   : > { %v1792_v61 = vmul.f32 %v3233_v23, %v3229_v52  ;;  %3008 = vmatprep.subr.bf16.mxu0 %v3461_v35  ;;  %v3174_v52 = vld [vmem:[%s3666_s26 + $0x30] ss:$8 sps:$4 sm:$0xff]  }
 0xae1   : > { %v1794_v0 = vpack.c.bf16 %v1792_v61, %v1792_v61 }
 0xae2   : > { %3009 = vmatpush3.bf16.msra.mxu0 %v3156_v14 }
 0xae3   : > { %3001 = vmatmul.mubr.msk.bf16.vlgmr.msra.gmra.mxu1 %vm1077_vm3, %v1794_v0  ;;  %3010 = vmatprep.subr.bf16.mxu0 %v3461_v35 }
 0xae4   : > { %2197 = vmatprep.mubr.bf16.mxu1 %v3460_v34  ;;  %v3159_v34 = vld [vmem:[%s3660_s15 + $0x10] sm:$0xff]   ;;  %2166 = vmatpush1.bf16.msra.mxu1 %v3162_v42 }
 0xae5   : > { %2167 = vmatprep.subr.bf16.mxu1 %v3167_v48 }
 0xae6   : > { %3011 = vmatpush3.bf16.msra.mxu0 %v3157_v4 }
 0xae7   : > { %3012 = vmatprep.subr.bf16.mxu0 %v3461_v35 }
 0xae8   : > { %2168 = vmatpush1.bf16.msra.mxu1 %v3165_v49 }
 0xae9   : > { %2169 = vmatprep.subr.bf16.mxu1 %v3170_v62 }
 0xaea   : > { %3013 = vmatpush3.bf16.msra.mxu0 %v3158_v5  ;;  %v2051_v5 = vrot.slane %v3958_v28, %v3779_v18  ;;  %v3196_v28 = vld [vmem:[%s3668_s19 + $0x50] sm:$0xff]  }
 0xaeb   : > { %3014 = vmatprep.subr.bf16.mxu0 %v3461_v35 }
 0xaec   : > { %2170 = vmatpush1.bf16.msra.mxu1 %v3168_v16 }
 0xaed   : > { %2171 = vmatprep.subr.bf16.mxu1 %v3173_v50 }
 0xaee   : > { %3015 = vmatpush3.bf16.msra.mxu0 %v3159_v34 }
 0xaef   : > { %3016 = vmatprep.subr.bf16.mxu0 %v3461_v35 }
 0xaf0   : > { %2172 = vmatpush1.bf16.msra.mxu1 %v3171_v25 }
 0xaf1   : > { %2173 = vmatprep.subr.bf16.mxu1 %v3176_v51 }
 0xaf2   : > { %3017 = vmatpush3.bf16.msra.mxu0 %v3160_v6 }
 0xaf3   : > { %3018 = vmatprep.subr.bf16.mxu0 %v3461_v35 }
 0xaf4   : > { %2174 = vmatpush1.bf16.msra.mxu1 %v3174_v52 }
 0xaf5   : > { %2175 = vmatprep.subr.bf16.mxu1 %v3179_v8 }
 0xaf6   : > { %3019 = vmatpush3.bf16.msra.mxu0 %v3161_v10 }
 0xaf8   : > { %2176 = vmatpush1.bf16.msra.mxu1 %v3177_v13 }
 0xaf9   : > { %2177 = vmatprep.subr.bf16.mxu1 %v3182_v53 }
 0xafc   : > { %2178 = vmatpush1.bf16.msra.mxu1 %v3180_v17 }
 0xafd   : > { %2179 = vmatprep.subr.bf16.mxu1 %v3185_v54 }
 0xb00   : > { %2180 = vmatpush1.bf16.msra.mxu1 %v3183_v57 }
 0xb99   : > { %v1837_v7 = vpop.f32.mrf.mxu0 }
 0xb9a   : > { %1893 = vrot.lane.b32.xlu0 %v1837_v7, %s3463_s24 }
 0xb9b   : > { %v2996_v9 = vpop.f32.mrf.mxu0 }
 0xb9d   : > { %v1840_v11 = vpop.f32.mrf.mxu0 }
 0xb9f   : > { %v2997_v12 = vpop.f32.mrf.mxu0 }
 0xba0   : > { %v3186_v12 = vld [vmem:[%s3668_s19 + $0x78] sm:$0xff]  }
 0xba1   : > { %2866 = vmatprep.subr.bf16.mxu0 %v3186_v12 }
 0xba3   : > { %v1885_v15 = vpop.f32.mrf.mxu1 }
 0xba4   : > { %1895 = vrot.lane.b32.xlu1 %v1885_v15, %s3463_s24  ;;  %v3187_v15 = vld [vmem:[%s3668_s19 + $0x38] sm:$0xff]  }
 0xba5   : > { %v3002_v19 = vpop.f32.mrf.mxu1 }
 0xba6   : > { %v3188_v19 = vld [vmem:[%s3668_s19 + $0x70] sm:$0xff]  }
 0xba7   : > { %v1888_v20 = vpop.f32.mrf.mxu1 }
 0xba8   : > { %v3189_v20 = vld [vmem:[%s3668_s19 + $0x30] sm:$0xff]  }
 0xba9   : > { %v3003_v21 = vpop.f32.mrf.mxu1 }
 0xbaa   : > { %v3190_v21 = vld [vmem:[%s3668_s19 + $0x68] sm:$0xff]  }
 0xc0c   : > { %v1894_v22 = vpop.permute.xlu0 %1893 }
 0xc0d   : > { %1900 = vst.msk [vmem:[#allocation3] sm:$0xff] %vm1899_vm6, %v1894_v22  ;;  %v3191_v22 = vld [vmem:[%s3668_s19 + $0x28] sm:$0xff]  }
 0xc14   : > { %v1903_v26 = vld [vmem:[#allocation3] sm:$0xff] }
 0xc16   : > { %v1896_v24 = vpop.permute.xlu1 %1895 }
 0xc17   : > { %1901 = vst.msk [vmem:[#allocation3 + $0x8] sm:$0xff] %vm1899_vm6, %v1896_v24  ;;  %v3192_v24 = vld [vmem:[%s3668_s19 + $0x60] sm:$0xff]  }
 0xc1e   : > { %v1904_v27 = vld [vmem:[#allocation3 + $0x8] sm:$0xff] }
 0xc1f   : > { %v1905_v35 = vpack.c.bf16 %v1904_v27, %v1903_v26  ;;  %v3193_v26 = vld [vmem:[%s3668_s19 + $0x20] sm:$0xff]   ;;  %v3194_v27 = vld [vmem:[%s3668_s19 + $0x58] sm:$0xff]  }
 0xc21   : > { %3021 = vmatmul.mubr.bf16.vlgmr.msra.gmra.mxu0 %v1905_v35  ;;  %v3195_v35 = vld [vmem:[%s3668_s19 + $0x18] sm:$0xff]  }
 0xc22   : > { %2867 = vmatpush3.bf16.msra.mxu0 %v3187_v15 }
 0xc23   : > { %2868 = vmatprep.subr.bf16.mxu0 %v3188_v19 }
 0xc26   : > { %2869 = vmatpush3.bf16.msra.mxu0 %v3189_v20 }
 0xc27   : > { %2870 = vmatprep.subr.bf16.mxu0 %v3190_v21 }
 0xc2a   : > { %2871 = vmatpush3.bf16.msra.mxu0 %v3191_v22 }
 0xc2b   : > { %2872 = vmatprep.subr.bf16.mxu0 %v3192_v24  ;;  %v2244_v24 = vld [vmem:[%s3694_s1] sm:$0x7] }
 0xc2e   : > { %2873 = vmatpush3.bf16.msra.mxu0 %v3193_v26 }
 0xc2f   : > { %2874 = vmatprep.subr.bf16.mxu0 %v3194_v27  ;;  %v2282_v27 = vrot.slane %v2244_v24, %v3754_v3 }
 0xc32   : > { %2875 = vmatpush3.bf16.msra.mxu0 %v3195_v35 }
 0xc33   : > { %2876 = vmatprep.subr.bf16.mxu0 %v3196_v28 }
 0xce1   : > { %v2008_v31 = vpop.f32.mrf.mxu0 }
 0xce2   : > { %v2009_v32 = vadd.f32 %v2008_v31, %v1925_v30  ;;  %v3198_v31 = vld [vmem:[%s3668_s19 + $0x48] sm:$0xff]  }
 0xce3   : > { %v3022_v33 = vpop.f32.mrf.mxu0 }
 0xce4   : > { %v2017_v36 = vadd.f32 %v2009_v32, %v3729_v55  ;;  %v3199_v32 = vld [vmem:[%s3668_s19 + $0x8] sm:$0xff]   ;;  %v3200_v33 = vld [vmem:[%s3668_s19 + $0x40] sm:$0xff]  }
 0xce5   : > { %v2011_v37 = vpop.f32.mrf.mxu0 }
 0xce6   : > { %v2012_v38 = vadd.f32 %v2011_v37, %v1925_v30  ;;  %2019 = vadd.xlane.f32.xlu0 %v2017_v36  ;;  %v3197_v30 = vld [vmem:[%s3668_s19 + $0x10] sm:$0xff]   ;;  %v2073_v37 = vld [vmem:[%s3689_s30] sm:$0x3] }
 0xce7   : > { %v3023_v40 = vpop.f32.mrf.mxu0  ;;  %2877 = vmatpush3.bf16.msra.mxu0 %v3197_v30 }
 0xce8   : > { %v2018_v41 = vadd.f32 %v2012_v38, %v3731_v56  ;;  %2878 = vmatprep.subr.bf16.mxu0 %v3198_v31  ;;  %v2078_v38 = vrot.slane %v2073_v37, %v3754_v3  ;;  %v2082_v40 = vrot.slane %v2073_v37, %v3750_v63 }
 0xcea   : > { %2021 = vadd.xlane.f32.xlu1 %v2018_v41 }
 0xceb   : > { %2879 = vmatpush3.bf16.msra.mxu0 %v3199_v32 }
 0xcec   : > { %2880 = vmatprep.subr.bf16.mxu0 %v3200_v33 }
 0xd6f   : > { %v2020_v29 = vpop.xlane.xlu0 %2019 }
 0xd70   : > { %v2024_v44 = vmul.f32 0.0078125, %v2020_v29 }
 0xd72   : > { %v2026_v45 = vsub.f32 %v2017_v36, %v2024_v44  ;;  %v3201_v36 = vld [vmem:[%s3668_s19] sm:$0xff]  }
 0xd73   : > { %v2022_v55 = vpop.xlane.xlu1 %2021  ;;  %2881 = vmatpush3.bf16.msra.mxu0 %v3201_v36 }
 0xd74   : > { %v2025_v39 = vmul.f32 0.0078125, %v2022_v55  ;;  %v2028_v46 = vmul.f32 %v2026_v45, %v2026_v45 }
 0xd76   : > { %v2027_v47 = vsub.f32 %v2018_v41, %v2025_v39  ;;  %2030 = vadd.xlane.f32.xlu0 %v2028_v46 }
 0xd78   : > { %v2029_v56 = vmul.f32 %v2027_v47, %v2027_v47 }
 0xd7a   : > { %2032 = vadd.xlane.f32.xlu0 %v2029_v56 }
 0xdff   : > { %v2031_v58 = vpop.xlane.xlu0 %2030 }
 0xe00   : > { %v2034_v59 = vmul.f32 0.0078125, %v2031_v58 }
 0xe02   : > { %v2036_v60 = vadd.f32 1e-12, %v2034_v59 }
 0xe03   : > { %v2033_v23 = vpop.xlane.xlu0 %2032 }
 0xe04   : > { %3234 = vrsqrt.f32 %v2036_v60  ;;  %v2035_v61 = vmul.f32 0.0078125, %v2033_v23 }
 0xe06   : > { %v2037_v0 = vadd.f32 1e-12, %v2035_v61 }
 0xe08   : > { %3236 = vrsqrt.f32 %v2037_v0 }
 0xe11   : > { %v3235_v1 = vpop.eup %3234 }
 0xe12   : > { %v2040_v14 = vmul.f32 %v3235_v1, %v2026_v45 }
 0xe14   : > { %v2046_v6 = vmul.f32 %v2045_v2, %v2040_v14 }
 0xe15   : > { %v3237_v4 = vpop.eup %3236 }
 0xe16   : > { %v2041_v34 = vmul.f32 %v3237_v4, %v2027_v47  ;;  %v3984_v9 = vadd.f32 %v2051_v5, %v2046_v6 }
 0xe18   : > { %v2047_v7 = vmul.f32 %v2045_v2, %v2041_v34 }
 0xe1a   : > { %v3986_v10 = vadd.f32 %v2051_v5, %v2047_v7 }
 0xe1c   : > { %v2056_v11 = vpack.c.bf16 %v3986_v10, %v3984_v9 }
 0xe1e   : > { %2198 = vmatmul.mubr.bf16.vlgmr.msra.gmra.mxu1 %v2056_v11 }
 0xede   : > { %v2199_v41 = vpop.f32.mrf.mxu1 }
 0xedf   : > { %v2200_v42 = vadd.f32 %v2199_v41, %v2078_v38 }
 0xee0   : > { %v2201_v43 = vpop.f32.mrf.mxu1 }
 0xee1   : > { %v2212_v29 = vmul.f32 0.044715, %v2200_v42  ;;  %v2202_v44 = vadd.f32 %v2201_v43, %v2082_v40  ;;  %v2208_v11 = vmul.f32 0.5, %v2200_v42 }
 0xee2   : > { %v2203_v45 = vpop.f32.mrf.mxu1 }
 0xee3   : > { %v2216_v55 = vmul.f32 %v2212_v29, %v2200_v42  ;;  %v2213_v39 = vmul.f32 0.044715, %v2202_v44  ;;  %v2204_v46 = vadd.f32 %v2203_v45, %v2078_v38  ;;  %v2209_v34 = vmul.f32 0.5, %v2202_v44 }
 0xee4   : > { %v2205_v47 = vpop.f32.mrf.mxu1 }
 0xee5   : > { %v2220_v56 = vmul.f32 %v2216_v55, %v2200_v42  ;;  %v2217_v48 = vmul.f32 %v2213_v39, %v2202_v44  ;;  %v2214_v49 = vmul.f32 0.044715, %v2204_v46  ;;  %v2206_v62 = vadd.f32 %v2205_v47, %v2082_v40 }
 0xee6   : > { %v2210_v4 = vmul.f32 0.5, %v2204_v46 }
 0xee7   : > { %v2224_v16 = vadd.f32 %v2220_v56, %v2200_v42  ;;  %v2221_v25 = vmul.f32 %v2217_v48, %v2202_v44  ;;  %v2218_v50 = vmul.f32 %v2214_v49, %v2204_v46  ;;  %v2215_v51 = vmul.f32 0.044715, %v2206_v62 }
 0xee8   : > { %v2211_v6 = vmul.f32 0.5, %v2206_v62  ;;  %v2455_v49 = vrot.slane %v2244_v24, %v3779_v18 }
 0xee9   : > { %v2222_v52 = vmul.f32 %v2218_v50, %v2204_v46  ;;  %v2219_v8 = vmul.f32 %v2215_v51, %v2206_v62  ;;  %v2225_v13 = vadd.f32 %v2221_v25, %v2202_v44  ;;  %v2228_v53 = vmul.f32 0.7978846, %v2224_v16 }
 0xeeb   : > { %v2226_v17 = vadd.f32 %v2222_v52, %v2204_v46  ;;  %v2223_v54 = vmul.f32 %v2219_v8, %v2206_v62  ;;  %v2229_v57 = vmul.f32 0.7978846, %v2225_v13 }
 0xeed   : > { %v2230_v58 = vmul.f32 0.7978846, %v2226_v17  ;;  %v2227_v59 = vadd.f32 %v2223_v54, %v2206_v62  ;;  %3238 = vtanh.f32 %v2229_v57 }
 0xeee   : > { %3240 = vtanh.f32 %v2228_v53 }
 0xeef   : > { %3242 = vtanh.f32 %v2230_v58  ;;  %v2231_v60 = vmul.f32 0.7978846, %v2227_v59 }
 0xef1   : > { %3244 = vtanh.f32 %v2231_v60 }
 0xefa   : > { %v3239_v23 = vpop.eup %3238 }
 0xefb   : > { %v3241_v61 = vpop.eup %3240  ;;  %v2237_v1 = vadd.f32 1.0, %v3239_v23 }
 0xefc   : > { %v3243_v0 = vpop.eup %3242  ;;  %v2236_v5 = vadd.f32 1.0, %v3241_v61 }
 0xefd   : > { %v2238_v2 = vadd.f32 1.0, %v3243_v0  ;;  %v2241_v15 = vmul.f32 %v2237_v1, %v2209_v34 }
 0xefe   : > { %v3245_v14 = vpop.eup %3244  ;;  %v2240_v20 = vmul.f32 %v2236_v5, %v2208_v11 }
 0xeff   : > { %v2239_v7 = vadd.f32 1.0, %v3245_v14  ;;  %v2242_v12 = vmul.f32 %v2238_v2, %v2210_v4 }
 0xf01   : > { %v2243_v19 = vmul.f32 %v2239_v7, %v2211_v6  ;;  %v2245_v22 = vpack.c.bf16 %v2242_v12, %v2240_v20 }
 0xf03   : > { %v2246_v21 = vpack.c.bf16 %v2243_v19, %v2241_v15 }
 0xf05   : > { %2411 = vmatprep.mubr.bf16.mxu0 %v2246_v21 }
 0xf06   : > { %2412 = vmatmul.mubr.bf16.vlgmr.msra.gmra.mxu0 %v2245_v22 }
 0xfc6   : > { %v2882_v26 = vpop.f32.mrf.mxu0 }
 0xfc8   : > { %v2883_v35 = vpop.f32.mrf.mxu0 }
 0xfc9   : > { %v2884_v28 = vadd.f32 %v2883_v35, %v2882_v26 }
 0xfca   : > { %v2885_v30 = vpop.f32.mrf.mxu0 }
 0xfcb   : > { %v2414_v31 = vadd.f32 %v2884_v28, %v2282_v27 }
 0xfcc   : > { %v2886_v32 = vpop.f32.mrf.mxu0 }
 0xfcd   : > { %v2887_v33 = vadd.f32 %v2886_v32, %v2885_v30  ;;  %v2422_v36 = vadd.f32 %v2414_v31, %v3984_v9 }
 0xfcf   : > { %v2417_v37 = vadd.f32 %v2887_v33, %v2282_v27  ;;  %2424 = vadd.xlane.f32.xlu0 %v2422_v36 }
 0xfd1   : > { %v2423_v38 = vadd.f32 %v2417_v37, %v3986_v10  ;;  %v2449_v10 = vrot.slane %v2244_v24, %v3750_v63 }
 0xfd3   : > { %2426 = vadd.xlane.f32.xlu1 %v2423_v38 }
0x1058   : > { %v2425_v40 = vpop.xlane.xlu0 %2424 }
0x1059   : > { %v2428_v41 = vmul.f32 0.0078125, %v2425_v40 }
0x105b   : > { %v2430_v42 = vsub.f32 %v2422_v36, %v2428_v41 }
0x105c   : > { %v2427_v43 = vpop.xlane.xlu1 %2426 }
0x105d   : > { %v2429_v29 = vmul.f32 0.0078125, %v2427_v43  ;;  %v2432_v44 = vmul.f32 %v2430_v42, %v2430_v42 }
0x105f   : > { %v2431_v3 = vsub.f32 %v2423_v38, %v2429_v29  ;;  %2434 = vadd.xlane.f32.xlu0 %v2432_v44 }
0x1061   : > { %v2433_v45 = vmul.f32 %v2431_v3, %v2431_v3 }
0x1063   : > { %2436 = vadd.xlane.f32.xlu1 %v2433_v45 }
0x10e8   : > { %v2435_v55 = vpop.xlane.xlu0 %2434 }
0x10e9   : > { %v2438_v39 = vmul.f32 0.0078125, %v2435_v55 }
0x10eb   : > { %v2440_v46 = vadd.f32 1e-12, %v2438_v39 }
0x10ec   : > { %v2437_v47 = vpop.xlane.xlu1 %2436 }
0x10ed   : > { %3246 = vrsqrt.f32 %v2440_v46  ;;  %v2439_v9 = vmul.f32 0.0078125, %v2437_v47 }
0x10ef   : > { %v2441_v56 = vadd.f32 1e-12, %v2439_v9 }
0x10f1   : > { %3248 = vrsqrt.f32 %v2441_v56 }
0x10fa   : > { %v3247_v48 = vpop.eup %3246 }
0x10fb   : > { %v2444_v62 = vmul.f32 %v3247_v48, %v2430_v42 }
0x10fd   : > { %v2450_v16 = vmul.f32 %v2449_v10, %v2444_v62 }
0x10fe   : > { %v3249_v25 = vpop.eup %3248 }
0x10ff   : > { %v2456_v50 = vadd.f32 %v2455_v49, %v2450_v16  ;;  %v2445_v51 = vmul.f32 %v3249_v25, %v2431_v3 }
0x1101   : > { %2458 = vst [vmem:[#allocation2] sm:$0xff] %v2456_v50  ;;  %v2451_v52 = vmul.f32 %v2449_v10, %v2445_v51  ;;  %2463 = sbr.rel (%p2793_p11) target bundleno = 4361 (0x1109), region = 88 }
0x1103   : > { %v2457_v8 = vadd.f32 %v2455_v49, %v2451_v52 }
0x1105   : > { %2459 = vst [vmem:[#allocation2 + $0x8] sm:$0xff] %v2457_v8 }
0x1106   : > { %v2814_v13 = vpack.c.bf16 %v2457_v8, %v2456_v50 }
0x1108   : > { %2815 = vst [vmem:[#allocation12] sm:$0xff] %v2814_v13  }
0x1109 PF: > { %p3054_p6 = scmp.eq.s32.totalorder %s3557_s23, 1  ;;  %s3466_s15 = smov [#allocation12]  }
0x110a   : > { %s2477_s26 = sshll.u32 %s3466_s15, 4  ;;  %s2478_s26 = int_to_ptr.vmem [resolvable:$true] %s2477_s26 }
0x110b   : > { %s3362_s19 = scalar_lea.vmem %s2478_s26, 128  ;;  %p3369_p0 = scmp.lt.s32.totalorder %s2478_s26, %s2478_s26 }
0x110c   : > { %p3363_p12 = scmp.ne.s32.totalorder %s2478_s26, %s3362_s19  ;;  %p3370_p1 = scmp.lt.s32.totalorder %s3362_s19, %s3362_s19 }
0x110e   : > { %p3364_p10 = pnand %p3363_p12, %p3054_p6  ;;  %p3371_p2 = por %p3370_p1, %p3369_p0 }
0x1110   : > { %p3365_p13 = pneg %p3364_p10 }
0x1112   : > { %p3372_p3 = pnand %p3371_p2, %p3365_p13 }
0x1114   : > { %3375 = shalt.err (!%p3372_p3)
}
0x1115   : > { %s3467_s20 = smov 4   ;;  %s4086_s12 = sld [smem:[#allocation26_spill]] }
0x111b   : > { %3037 = dma.vmem_to_hbm [thread:$0]  (%p3054_p6), %s2478_s26, 128, %s4086_s12, [#allocation6], %s3464_s27, %s3464_s27, %s3467_s20  }
0x111c   : > { %3423 = dma.done.wait (%p3054_p6), [#allocation6], 128  }
0x111d   : > { %3425 = vsyncadd (%p3054_p6), [#allocation6], 4294967168 }
0x111e PF: > { %s4087_s1 = sld [smem:[#allocation18_spill]]  ;;  %s4091_s17 = smov %s3432_s18 }
0x111f   : > { %s4088_s11 = sld [smem:[#allocation17_spill]]  ;;  %s4093_s20 = smov %s3444_s21 }
0x1120   : > { %s4089_s19 = sld [smem:[#allocation20_spill]] }
0x1121   : > { %s4090_s3 = sld [smem:[#allocation19_spill]] }
0x1124   : > { %s31_s22 = sadd.s32 1, %s4087_s1  }
0x1125   : > { %p28_p4 = scmp.ge.s32.totalorder %s31_s22, 4   ;;  %s4092_s18 = smov %s4088_s11 }
0x1127   : > { %s4094_s21 = smov %s4090_s3  ;;  %30 = sbr.rel (!%p28_p4) target bundleno = 16 (0x10), region = 165 }
0x112c   :  { %2493 = vsyncpa [#allocation5], 1 }
0x112d   :  { %2495 = vsyncpa [#allocation5 + $0x1], 1 }
0x112e   :  { %2496 = vsyncpa [#allocation8], 1 }
0x112f   :  { %2498 = vsyncpa [#allocation8 + $0x1], 1 }
0x1130   :  { %2499 = vsyncpa [#allocation11], 1 }
0x1131   :  { %2501 = vsyncpa [#allocation11 + $0x1], 1 }
0x1132   :  { %2502 = vsyncpa [#allocation6], 1 }
0x1133   :  { %2504 = vsyncpa [#allocation6 + $0x1], 1 }

</bundles_post_ra>
